<compile_context>
chip_gen: v7x
topology: tpu7x:2x2x1
jax: 0.10.0
libtpu: 0.0.40
codegen_flags: <defaults>
</compile_context>

<pallas_src>
import functools

import numpy as np
import jax
import jax.numpy as jnp
from jax import lax
from jax.experimental import pallas as pl
from jax.experimental.pallas import tpu as pltpu


# --------------------------------------------------------------------------
# Fused LeNet kernel (one grid step == one image)
# --------------------------------------------------------------------------

def _sel_rows(n_out, n_in, offset, dtype):
    """S[r, c] = 1 where c == 2*r + offset  (picks every other row)."""
    r = lax.broadcasted_iota(jnp.int32, (n_out, n_in), 0)
    c = lax.broadcasted_iota(jnp.int32, (n_out, n_in), 1)
    return (c == 2 * r + offset).astype(dtype)


def _sel_cols(n_in, n_out, offset, dtype):
    """S[c, s] = 1 where c == 2*s + offset  (picks every other column)."""
    c = lax.broadcasted_iota(jnp.int32, (n_in, n_out), 0)
    s = lax.broadcasted_iota(jnp.int32, (n_in, n_out), 1)
    return (c == 2 * s + offset).astype(dtype)


def _maxpool2x2(y):
    """2x2 / stride-2 max pool of a (H, C*W) tile -> (H//2, C*(W//2)).

    W is even, so 2x2 windows never straddle a channel block.  Even/odd row and
    column extraction is done with exact 0/1 selection matmuls (robust,
    well-supported ops; MXU cost is negligible at this size).
    """
    R, C = y.shape
    f32 = jnp.float32
    r0 = jnp.dot(_sel_rows(R // 2, R, 0, y.dtype), y, preferred_element_type=f32)
    r1 = jnp.dot(_sel_rows(R // 2, R, 1, y.dtype), y, preferred_element_type=f32)
    rows = jnp.maximum(r0, r1)
    c0 = jnp.dot(rows, _sel_cols(C, C // 2, 0, y.dtype), preferred_element_type=f32)
    c1 = jnp.dot(rows, _sel_cols(C, C // 2, 1, y.dtype), preferred_element_type=f32)
    return jnp.maximum(c0, c1)


def _lenet_kernel(x_ref, a1_ref, b1_ref, a2_ref, b2_ref,
                  wfc1_ref, bfc1_ref, wfc2_ref, bfc2_ref, wfc3_ref, bfc3_ref,
                  o_ref):
    f32 = jnp.float32
    x = x_ref[0]                                   # (32, 3*32)  rows=h, cols=c*32+w

    # conv1 (5x5, 3->6) + bias + ReLU: 5 banded matmuls, everything in VMEM.
    acc1 = jnp.zeros((28, 6 * 28), f32)
    for ki in range(5):
        acc1 = acc1 + jnp.dot(x[ki:ki + 28, :], a1_ref[ki],
                              preferred_element_type=f32)
    act1 = jnp.maximum(acc1 + b1_ref[...], 0.0)    # (28, 168)

    p1 = _maxpool2x2(act1)                         # (14, 6*14)

    # conv2 (5x5, 6->16) + bias + ReLU.
    acc2 = jnp.zeros((10, 16 * 10), f32)
    for ki in range(5):
        acc2 = acc2 + jnp.dot(p1[ki:ki + 10, :], a2_ref[ki],
                              preferred_element_type=f32)
    act2 = jnp.maximum(acc2 + b2_ref[...], 0.0)    # (10, 160)

    p2 = _maxpool2x2(act2)                         # (5, 16*5)

    # fc1: contract over (row, oc*5+w) without any in-kernel flatten.
    h1 = jnp.zeros((1, 120), f32)
    for h in range(5):
        h1 = h1 + jnp.dot(p2[h:h + 1, :], wfc1_ref[h],
                          preferred_element_type=f32)
    h1 = jnp.maximum(h1 + bfc1_ref[...], 0.0)      # (1, 120)

    h2 = jnp.maximum(jnp.dot(h1, wfc2_ref[...], preferred_element_type=f32)
                     + bfc2_ref[...], 0.0)         # (1, 84)

    out = jnp.dot(h2, wfc3_ref[...], preferred_element_type=f32) + bfc3_ref[...]
    o_ref[0] = out.astype(o_ref.dtype)             # lane-dense (1, 128) store


# --------------------------------------------------------------------------
# Wrapper
# --------------------------------------------------------------------------

def _full_spec(shape):
    nd = len(shape)
    return pl.BlockSpec(shape, lambda b, _nd=nd: (0,) * _nd)


def lenet_forward(prep, x, *, num_classes):
    """x: (B, 3, 32, 32) float32 NCHW (PyTorch layout). Returns (B, num_classes)."""
    B = x.shape[0]
    # Single cheap layout transform: NCHW -> (B, H, C*W), one 2-D tile per image.
    x2 = jnp.transpose(x, (0, 2, 1, 3)).reshape(B, 32, 3 * 32).astype(jnp.float32)

    out = pl.pallas_call(
        _lenet_kernel,
        out_shape=jax.ShapeDtypeStruct((B, 1, 128), jnp.float32),
        grid=(B,),
        in_specs=[
            pl.BlockSpec((1, 32, 96), lambda b: (b, 0, 0)),      # per-image input
            _full_spec((5, 96, 168)), _full_spec((1, 168)),       # conv1 bands / bias
            _full_spec((5, 84, 160)), _full_spec((1, 160)),       # conv2 bands / bias
            _full_spec((5, 80, 120)), _full_spec((1, 120)),       # fc1
            _full_spec((120, 84)),    _full_spec((1, 84)),        # fc2
            _full_spec((84, 128)),    _full_spec((1, 128)),       # fc3 (padded to 128)
        ],
        out_specs=pl.BlockSpec((1, 1, 128), lambda b: (b, 0, 0)),
        compiler_params=pltpu.CompilerParams(
            dimension_semantics=("parallel",)),                   # 2 TCs on v7x
    )(x2, prep["a1"], prep["b1"], prep["a2"], prep["b2"],
      prep["wfc1"], prep["bfc1"], prep["wfc2"], prep["bfc2"],
      prep["wfc3"], prep["bfc3"])

    return out.reshape(B, 128)[:, :num_classes]


# --------------------------------------------------------------------------
# Parameter preparation (done ONCE, outside jit)
# --------------------------------------------------------------------------

def _conv_band_matrices(w, w_in, ow):
    """Torch conv weight (OC, C, KH, KW) -> band matrices A (KH, C*w_in, OC*ow)
    such that out2d[oh, oc*ow + o] = sum_ki (x2d[oh+ki, :] @ A[ki])[oc*ow + o]
    for x2d[h, c*w_in + j] = x[c, h, j] (valid conv, stride 1)."""
    w = np.asarray(w, np.float32)
    oc_n, c_n, kh, kw = w.shape
    A = np.zeros((kh, c_n * w_in, oc_n * ow), np.float32)
    rows_c = np.arange(c_n)[:, None] * w_in      # (C, 1)
    cols_oc = np.arange(oc_n)[None, :] * ow      # (1, OC)
    for ki in range(kh):
        for kj in range(kw):
            wt = w[:, :, ki, kj].T               # (C, OC)
            for o in range(ow):
                A[ki, rows_c + o + kj, cols_oc + o] = wt
    return A


def prepare_params(params, num_classes):
    """PyTorch-layout params -> kernel-ready layouts (band matrices, transposes,
    NCHW-flatten permutation, lane padding)."""
    assert num_classes <= 128
    p = {k: np.asarray(v, np.float32) for k, v in params.items()}

    a1 = _conv_band_matrices(p["conv1_w"], w_in=32, ow=28)          # (5, 96, 168)
    a2 = _conv_band_matrices(p["conv2_w"], w_in=14, ow=10)          # (5, 84, 160)
    b1 = np.repeat(p["conv1_b"], 28)[None, :]                       # (1, 168)
    b2 = np.repeat(p["conv2_b"], 10)[None, :]                       # (1, 160)

    # fc1: reorder columns from PyTorch NCHW flatten (oc, h, w) to the kernel's
    # (h, oc*5 + w) activation layout; keep as (5, 80, 120) -> no in-kernel flatten.
    wfc1 = p["fc1_w"].reshape(120, 16, 5, 5).transpose(2, 1, 3, 0).reshape(5, 80, 120)
    bfc1 = p["fc1_b"][None, :]                                      # (1, 120)

    wfc2 = p["fc2_w"].T                                             # (120, 84)
    bfc2 = p["fc2_b"][None, :]                                      # (1, 84)

    # fc3: zero-pad the output dim to 128 so the only HBM store is lane-dense.
    wfc3 = np.zeros((84, 128), np.float32)
    wfc3[:, :num_classes] = p["fc3_w"].T
    bfc3 = np.zeros((1, 128), np.float32)
    bfc3[0, :num_classes] = p["fc3_b"]

    to_dev = lambda a: jnp.asarray(a, jnp.float32)
    return {"a1": to_dev(a1), "b1": to_dev(b1),
            "a2": to_dev(a2), "b2": to_dev(b2),
            "wfc1": to_dev(wfc1), "bfc1": to_dev(bfc1),
            "wfc2": to_dev(wfc2), "bfc2": to_dev(bfc2),
            "wfc3": to_dev(wfc3), "bfc3": to_dev(bfc3)}


# --------------------------------------------------------------------------
# PyTorch-style init + pure-JAX reference (for the self-check)
# --------------------------------------------------------------------------

def init_params(key, num_classes):
    ks = jax.random.split(key, 10)

    def u(k, shape, fan_in):
        bound = 1.0 / jnp.sqrt(jnp.float32(fan_in))
        return jax.random.uniform(k, shape, jnp.float32, -bound, bound)

    return {
        "conv1_w": u(ks[0], (6, 3, 5, 5), 3 * 5 * 5),
        "conv1_b": u(ks[1], (6,), 3 * 5 * 5),
        "conv2_w": u(ks[2], (16, 6, 5, 5), 6 * 5 * 5),
        "conv2_b": u(ks[3], (16,), 6 * 5 * 5),
        "fc1_w": u(ks[4], (120, 16 * 5 * 5), 16 * 5 * 5),
        "fc1_b": u(ks[5], (120,), 16 * 5 * 5),
        "fc2_w": u(ks[6], (84, 120), 120),
        "fc2_b": u(ks[7], (84,), 120),
        "fc3_w": u(ks[8], (num_classes, 84), 84),
        "fc3_b": u(ks[9], (num_classes,), 84),
    }


def lenet_reference(params, x):
    def conv(z, w, b):
        y = lax.conv_general_dilated(z, w, (1, 1), "VALID",
                                     dimension_numbers=("NCHW", "OIHW", "NCHW"))
        return jax.nn.relu(y + b[None, :, None, None])

    def pool(z):
        return lax.reduce_window(z, -jnp.inf, lax.max,
                                 (1, 1, 2, 2), (1, 1, 2, 2), "VALID")

    out = pool(conv(x, params["conv1_w"], params["conv1_b"]))
    out = pool(conv(out, params["conv2_w"], params["conv2_b"]))
    out = out.reshape(out.shape[0], -1)
    out = jax.nn.relu(out @ params["fc1_w"].T + params["fc1_b"])
    out = jax.nn.relu(out @ params["fc2_w"].T + params["fc2_b"])
    return out @ params["fc3_w"].T + params["fc3_b"]


if __name__ == "__main__":
    num_classes = 10
    key = jax.random.PRNGKey(0)
    pkey, xkey = jax.random.split(key)
    params = init_params(pkey, num_classes)
    prep = prepare_params(params, num_classes)

    # LeNet's flatten (16*5*5) fixes the spatial size at 32x32; batch = 2.
    x = jax.random.normal(xkey, (2, 3, 32, 32), jnp.float32)

    fwd = jax.jit(functools.partial(lenet_forward, num_classes=num_classes))
    out = jax.block_until_ready(fwd(prep, x))

    assert out.shape == (2, num_classes)
    assert bool(jnp.all(jnp.isfinite(out)))

    ref = lenet_reference(params, x)
    assert bool(jnp.allclose(out, ref, rtol=2e-2, atol=2e-2)), \
        "Pallas LeNet deviates from the pure-JAX reference"

    print("KERNEL_OK")
</pallas_src>

<mosaic_0001>
module attributes {stable_mosaic.version = 11 : i64} {
  func.func @_lenet_kernel(%arg0: i32, %arg1: memref<1x32x96xf32, #tpu.memory_space<vmem>>, %arg2: memref<5x96x168xf32, #tpu.memory_space<vmem>>, %arg3: memref<1x168xf32, #tpu.memory_space<vmem>>, %arg4: memref<5x84x160xf32, #tpu.memory_space<vmem>>, %arg5: memref<1x160xf32, #tpu.memory_space<vmem>>, %arg6: memref<5x80x120xf32, #tpu.memory_space<vmem>>, %arg7: memref<1x120xf32, #tpu.memory_space<vmem>>, %arg8: memref<120x84xf32, #tpu.memory_space<vmem>>, %arg9: memref<1x84xf32, #tpu.memory_space<vmem>>, %arg10: memref<84x128xf32, #tpu.memory_space<vmem>>, %arg11: memref<1x128xf32, #tpu.memory_space<vmem>>, %arg12: memref<1x1x128xf32, #tpu.memory_space<vmem>>) attributes {dimension_semantics = [#tpu.dimension_semantics<parallel>], iteration_bounds = array<i64: 2>, scalar_prefetch = 0 : i64, scratch_operands = 0 : i64, tpu.core_type = #tpu.core_type<tc>, window_params = [{transform_indices = @transform_0, window_bounds = array<i64: 1, 32, 96>}, {pipeline_mode = #tpu.pipeline_mode<synchronous>, transform_indices = @transform_1, window_bounds = array<i64: 5, 96, 168>}, {pipeline_mode = #tpu.pipeline_mode<synchronous>, transform_indices = @transform_2, window_bounds = array<i64: 1, 168>}, {pipeline_mode = #tpu.pipeline_mode<synchronous>, transform_indices = @transform_3, window_bounds = array<i64: 5, 84, 160>}, {pipeline_mode = #tpu.pipeline_mode<synchronous>, transform_indices = @transform_4, window_bounds = array<i64: 1, 160>}, {pipeline_mode = #tpu.pipeline_mode<synchronous>, transform_indices = @transform_5, window_bounds = array<i64: 5, 80, 120>}, {pipeline_mode = #tpu.pipeline_mode<synchronous>, transform_indices = @transform_6, window_bounds = array<i64: 1, 120>}, {pipeline_mode = #tpu.pipeline_mode<synchronous>, transform_indices = @transform_7, window_bounds = array<i64: 120, 84>}, {pipeline_mode = #tpu.pipeline_mode<synchronous>, transform_indices = @transform_8, window_bounds = array<i64: 1, 84>}, {pipeline_mode = #tpu.pipeline_mode<synchronous>, transform_indices = @transform_9, window_bounds = array<i64: 84, 128>}, {pipeline_mode = #tpu.pipeline_mode<synchronous>, transform_indices = @transform_10, window_bounds = array<i64: 1, 128>}, {transform_indices = @transform_11, window_bounds = array<i64: 1, 1, 128>}]} {
    %c0 = arith.constant 0 : index
    %c0_0 = arith.constant 0 : index
    %c0_1 = arith.constant 0 : index
    %0 = vector.load %arg1[%c0, %c0_0, %c0_1] : memref<1x32x96xf32, #tpu.memory_space<vmem>>, vector<1x32x96xf32>
    %1 = vector.shape_cast %0 : vector<1x32x96xf32> to vector<32x96xf32>
    %cst = arith.constant 0.000000e+00 : f32
    %2 = vector.broadcast %cst : f32 to vector<28x168xf32>
    %3 = vector.extract_strided_slice %1 {offsets = [0, 0], sizes = [28, 96], strides = [1, 1]} : vector<32x96xf32> to vector<28x96xf32>
    %c0_2 = arith.constant 0 : index
    %c0_3 = arith.constant 0 : index
    %c0_4 = arith.constant 0 : index
    %4 = vector.load %arg2[%c0_2, %c0_3, %c0_4] : memref<5x96x168xf32, #tpu.memory_space<vmem>>, vector<1x96x168xf32>
    %5 = vector.shape_cast %4 : vector<1x96x168xf32> to vector<96x168xf32>
    %cst_5 = arith.constant dense<0.000000e+00> : vector<28x168xf32>
    %6 = tpu.matmul %3, %5, %cst_5 {dimension_numbers = #tpu.dot_dimension_numbers<[1], [0], [0], [1], [0, 0, 1, 1], [], []>} : vector<28x96xf32>, vector<96x168xf32>, vector<28x168xf32> -> vector<28x168xf32>
    %7 = arith.addf %2, %6 : vector<28x168xf32>
    %8 = vector.extract_strided_slice %1 {offsets = [1, 0], sizes = [28, 96], strides = [1, 1]} : vector<32x96xf32> to vector<28x96xf32>
    %c1 = arith.constant 1 : index
    %c0_6 = arith.constant 0 : index
    %c0_7 = arith.constant 0 : index
    %9 = vector.load %arg2[%c1, %c0_6, %c0_7] : memref<5x96x168xf32, #tpu.memory_space<vmem>>, vector<1x96x168xf32>
    %10 = vector.shape_cast %9 : vector<1x96x168xf32> to vector<96x168xf32>
    %cst_8 = arith.constant dense<0.000000e+00> : vector<28x168xf32>
    %11 = tpu.matmul %8, %10, %cst_8 {dimension_numbers = #tpu.dot_dimension_numbers<[1], [0], [0], [1], [0, 0, 1, 1], [], []>} : vector<28x96xf32>, vector<96x168xf32>, vector<28x168xf32> -> vector<28x168xf32>
    %12 = arith.addf %7, %11 : vector<28x168xf32>
    %13 = vector.extract_strided_slice %1 {offsets = [2, 0], sizes = [28, 96], strides = [1, 1]} : vector<32x96xf32> to vector<28x96xf32>
    %c2 = arith.constant 2 : index
    %c0_9 = arith.constant 0 : index
    %c0_10 = arith.constant 0 : index
    %14 = vector.load %arg2[%c2, %c0_9, %c0_10] : memref<5x96x168xf32, #tpu.memory_space<vmem>>, vector<1x96x168xf32>
    %15 = vector.shape_cast %14 : vector<1x96x168xf32> to vector<96x168xf32>
    %cst_11 = arith.constant dense<0.000000e+00> : vector<28x168xf32>
    %16 = tpu.matmul %13, %15, %cst_11 {dimension_numbers = #tpu.dot_dimension_numbers<[1], [0], [0], [1], [0, 0, 1, 1], [], []>} : vector<28x96xf32>, vector<96x168xf32>, vector<28x168xf32> -> vector<28x168xf32>
    %17 = arith.addf %12, %16 : vector<28x168xf32>
    %18 = vector.extract_strided_slice %1 {offsets = [3, 0], sizes = [28, 96], strides = [1, 1]} : vector<32x96xf32> to vector<28x96xf32>
    %c3 = arith.constant 3 : index
    %c0_12 = arith.constant 0 : index
    %c0_13 = arith.constant 0 : index
    %19 = vector.load %arg2[%c3, %c0_12, %c0_13] : memref<5x96x168xf32, #tpu.memory_space<vmem>>, vector<1x96x168xf32>
    %20 = vector.shape_cast %19 : vector<1x96x168xf32> to vector<96x168xf32>
    %cst_14 = arith.constant dense<0.000000e+00> : vector<28x168xf32>
    %21 = tpu.matmul %18, %20, %cst_14 {dimension_numbers = #tpu.dot_dimension_numbers<[1], [0], [0], [1], [0, 0, 1, 1], [], []>} : vector<28x96xf32>, vector<96x168xf32>, vector<28x168xf32> -> vector<28x168xf32>
    %22 = arith.addf %17, %21 : vector<28x168xf32>
    %23 = vector.extract_strided_slice %1 {offsets = [4, 0], sizes = [28, 96], strides = [1, 1]} : vector<32x96xf32> to vector<28x96xf32>
    %c4 = arith.constant 4 : index
    %c0_15 = arith.constant 0 : index
    %c0_16 = arith.constant 0 : index
    %24 = vector.load %arg2[%c4, %c0_15, %c0_16] : memref<5x96x168xf32, #tpu.memory_space<vmem>>, vector<1x96x168xf32>
    %25 = vector.shape_cast %24 : vector<1x96x168xf32> to vector<96x168xf32>
    %cst_17 = arith.constant dense<0.000000e+00> : vector<28x168xf32>
    %26 = tpu.matmul %23, %25, %cst_17 {dimension_numbers = #tpu.dot_dimension_numbers<[1], [0], [0], [1], [0, 0, 1, 1], [], []>} : vector<28x96xf32>, vector<96x168xf32>, vector<28x168xf32> -> vector<28x168xf32>
    %27 = arith.addf %22, %26 : vector<28x168xf32>
    %c0_18 = arith.constant 0 : index
    %c0_19 = arith.constant 0 : index
    %28 = vector.load %arg3[%c0_18, %c0_19] : memref<1x168xf32, #tpu.memory_space<vmem>>, vector<1x168xf32>
    %29 = vector.broadcast %28 : vector<1x168xf32> to vector<28x168xf32>
    %30 = arith.addf %27, %29 : vector<28x168xf32>
    %cst_20 = arith.constant 0.000000e+00 : f32
    %31 = vector.broadcast %cst_20 : f32 to vector<28x168xf32>
    %32 = arith.maximumf %30, %31 : vector<28x168xf32>
    %33 = tpu.iota {dimensions = array<i32: 0>} : vector<14x28xi32>
    %34 = tpu.iota {dimensions = array<i32: 1>} : vector<14x28xi32>
    %c2_i32 = arith.constant 2 : i32
    %35 = vector.broadcast %c2_i32 : i32 to vector<14x28xi32>
    %36 = arith.muli %35, %33 : vector<14x28xi32>
    %c0_i32 = arith.constant 0 : i32
    %37 = vector.broadcast %c0_i32 : i32 to vector<14x28xi32>
    %38 = arith.addi %36, %37 : vector<14x28xi32>
    %39 = arith.cmpi eq, %34, %38 : vector<14x28xi32>
    %40 = arith.extui %39 : vector<14x28xi1> to vector<14x28xi32>
    %41 = arith.sitofp %40 : vector<14x28xi32> to vector<14x28xf32>
    %cst_21 = arith.constant dense<0.000000e+00> : vector<14x168xf32>
    %42 = tpu.matmul %41, %32, %cst_21 {dimension_numbers = #tpu.dot_dimension_numbers<[1], [0], [0], [1], [0, 0, 1, 1], [], []>} : vector<14x28xf32>, vector<28x168xf32>, vector<14x168xf32> -> vector<14x168xf32>
    %43 = tpu.iota {dimensions = array<i32: 0>} : vector<14x28xi32>
    %44 = tpu.iota {dimensions = array<i32: 1>} : vector<14x28xi32>
    %c2_i32_22 = arith.constant 2 : i32
    %45 = vector.broadcast %c2_i32_22 : i32 to vector<14x28xi32>
    %46 = arith.muli %45, %43 : vector<14x28xi32>
    %c1_i32 = arith.constant 1 : i32
    %47 = vector.broadcast %c1_i32 : i32 to vector<14x28xi32>
    %48 = arith.addi %46, %47 : vector<14x28xi32>
    %49 = arith.cmpi eq, %44, %48 : vector<14x28xi32>
    %50 = arith.extui %49 : vector<14x28xi1> to vector<14x28xi32>
    %51 = arith.sitofp %50 : vector<14x28xi32> to vector<14x28xf32>
    %cst_23 = arith.constant dense<0.000000e+00> : vector<14x168xf32>
    %52 = tpu.matmul %51, %32, %cst_23 {dimension_numbers = #tpu.dot_dimension_numbers<[1], [0], [0], [1], [0, 0, 1, 1], [], []>} : vector<14x28xf32>, vector<28x168xf32>, vector<14x168xf32> -> vector<14x168xf32>
    %53 = arith.maximumf %42, %52 : vector<14x168xf32>
    %54 = tpu.iota {dimensions = array<i32: 0>} : vector<168x84xi32>
    %55 = tpu.iota {dimensions = array<i32: 1>} : vector<168x84xi32>
    %c2_i32_24 = arith.constant 2 : i32
    %56 = vector.broadcast %c2_i32_24 : i32 to vector<168x84xi32>
    %57 = arith.muli %56, %55 : vector<168x84xi32>
    %c0_i32_25 = arith.constant 0 : i32
    %58 = vector.broadcast %c0_i32_25 : i32 to vector<168x84xi32>
    %59 = arith.addi %57, %58 : vector<168x84xi32>
    %60 = arith.cmpi eq, %54, %59 : vector<168x84xi32>
    %61 = arith.extui %60 : vector<168x84xi1> to vector<168x84xi32>
    %62 = arith.sitofp %61 : vector<168x84xi32> to vector<168x84xf32>
    %cst_26 = arith.constant dense<0.000000e+00> : vector<14x84xf32>
    %63 = tpu.matmul %53, %62, %cst_26 {dimension_numbers = #tpu.dot_dimension_numbers<[1], [0], [0], [1], [0, 0, 1, 1], [], []>} : vector<14x168xf32>, vector<168x84xf32>, vector<14x84xf32> -> vector<14x84xf32>
    %64 = tpu.iota {dimensions = array<i32: 0>} : vector<168x84xi32>
    %65 = tpu.iota {dimensions = array<i32: 1>} : vector<168x84xi32>
    %c2_i32_27 = arith.constant 2 : i32
    %66 = vector.broadcast %c2_i32_27 : i32 to vector<168x84xi32>
    %67 = arith.muli %66, %65 : vector<168x84xi32>
    %c1_i32_28 = arith.constant 1 : i32
    %68 = vector.broadcast %c1_i32_28 : i32 to vector<168x84xi32>
    %69 = arith.addi %67, %68 : vector<168x84xi32>
    %70 = arith.cmpi eq, %64, %69 : vector<168x84xi32>
    %71 = arith.extui %70 : vector<168x84xi1> to vector<168x84xi32>
    %72 = arith.sitofp %71 : vector<168x84xi32> to vector<168x84xf32>
    %cst_29 = arith.constant dense<0.000000e+00> : vector<14x84xf32>
    %73 = tpu.matmul %53, %72, %cst_29 {dimension_numbers = #tpu.dot_dimension_numbers<[1], [0], [0], [1], [0, 0, 1, 1], [], []>} : vector<14x168xf32>, vector<168x84xf32>, vector<14x84xf32> -> vector<14x84xf32>
    %74 = arith.maximumf %63, %73 : vector<14x84xf32>
    %cst_30 = arith.constant 0.000000e+00 : f32
    %75 = vector.broadcast %cst_30 : f32 to vector<10x160xf32>
    %76 = vector.extract_strided_slice %74 {offsets = [0, 0], sizes = [10, 84], strides = [1, 1]} : vector<14x84xf32> to vector<10x84xf32>
    %c0_31 = arith.constant 0 : index
    %c0_32 = arith.constant 0 : index
    %c0_33 = arith.constant 0 : index
    %77 = vector.load %arg4[%c0_31, %c0_32, %c0_33] : memref<5x84x160xf32, #tpu.memory_space<vmem>>, vector<1x84x160xf32>
    %78 = vector.shape_cast %77 : vector<1x84x160xf32> to vector<84x160xf32>
    %cst_34 = arith.constant dense<0.000000e+00> : vector<10x160xf32>
    %79 = tpu.matmul %76, %78, %cst_34 {dimension_numbers = #tpu.dot_dimension_numbers<[1], [0], [0], [1], [0, 0, 1, 1], [], []>} : vector<10x84xf32>, vector<84x160xf32>, vector<10x160xf32> -> vector<10x160xf32>
    %80 = arith.addf %75, %79 : vector<10x160xf32>
    %81 = vector.extract_strided_slice %74 {offsets = [1, 0], sizes = [10, 84], strides = [1, 1]} : vector<14x84xf32> to vector<10x84xf32>
    %c1_35 = arith.constant 1 : index
    %c0_36 = arith.constant 0 : index
    %c0_37 = arith.constant 0 : index
    %82 = vector.load %arg4[%c1_35, %c0_36, %c0_37] : memref<5x84x160xf32, #tpu.memory_space<vmem>>, vector<1x84x160xf32>
    %83 = vector.shape_cast %82 : vector<1x84x160xf32> to vector<84x160xf32>
    %cst_38 = arith.constant dense<0.000000e+00> : vector<10x160xf32>
    %84 = tpu.matmul %81, %83, %cst_38 {dimension_numbers = #tpu.dot_dimension_numbers<[1], [0], [0], [1], [0, 0, 1, 1], [], []>} : vector<10x84xf32>, vector<84x160xf32>, vector<10x160xf32> -> vector<10x160xf32>
    %85 = arith.addf %80, %84 : vector<10x160xf32>
    %86 = vector.extract_strided_slice %74 {offsets = [2, 0], sizes = [10, 84], strides = [1, 1]} : vector<14x84xf32> to vector<10x84xf32>
    %c2_39 = arith.constant 2 : index
    %c0_40 = arith.constant 0 : index
    %c0_41 = arith.constant 0 : index
    %87 = vector.load %arg4[%c2_39, %c0_40, %c0_41] : memref<5x84x160xf32, #tpu.memory_space<vmem>>, vector<1x84x160xf32>
    %88 = vector.shape_cast %87 : vector<1x84x160xf32> to vector<84x160xf32>
    %cst_42 = arith.constant dense<0.000000e+00> : vector<10x160xf32>
    %89 = tpu.matmul %86, %88, %cst_42 {dimension_numbers = #tpu.dot_dimension_numbers<[1], [0], [0], [1], [0, 0, 1, 1], [], []>} : vector<10x84xf32>, vector<84x160xf32>, vector<10x160xf32> -> vector<10x160xf32>
    %90 = arith.addf %85, %89 : vector<10x160xf32>
    %91 = vector.extract_strided_slice %74 {offsets = [3, 0], sizes = [10, 84], strides = [1, 1]} : vector<14x84xf32> to vector<10x84xf32>
    %c3_43 = arith.constant 3 : index
    %c0_44 = arith.constant 0 : index
    %c0_45 = arith.constant 0 : index
    %92 = vector.load %arg4[%c3_43, %c0_44, %c0_45] : memref<5x84x160xf32, #tpu.memory_space<vmem>>, vector<1x84x160xf32>
    %93 = vector.shape_cast %92 : vector<1x84x160xf32> to vector<84x160xf32>
    %cst_46 = arith.constant dense<0.000000e+00> : vector<10x160xf32>
    %94 = tpu.matmul %91, %93, %cst_46 {dimension_numbers = #tpu.dot_dimension_numbers<[1], [0], [0], [1], [0, 0, 1, 1], [], []>} : vector<10x84xf32>, vector<84x160xf32>, vector<10x160xf32> -> vector<10x160xf32>
    %95 = arith.addf %90, %94 : vector<10x160xf32>
    %96 = vector.extract_strided_slice %74 {offsets = [4, 0], sizes = [10, 84], strides = [1, 1]} : vector<14x84xf32> to vector<10x84xf32>
    %c4_47 = arith.constant 4 : index
    %c0_48 = arith.constant 0 : index
    %c0_49 = arith.constant 0 : index
    %97 = vector.load %arg4[%c4_47, %c0_48, %c0_49] : memref<5x84x160xf32, #tpu.memory_space<vmem>>, vector<1x84x160xf32>
    %98 = vector.shape_cast %97 : vector<1x84x160xf32> to vector<84x160xf32>
    %cst_50 = arith.constant dense<0.000000e+00> : vector<10x160xf32>
    %99 = tpu.matmul %96, %98, %cst_50 {dimension_numbers = #tpu.dot_dimension_numbers<[1], [0], [0], [1], [0, 0, 1, 1], [], []>} : vector<10x84xf32>, vector<84x160xf32>, vector<10x160xf32> -> vector<10x160xf32>
    %100 = arith.addf %95, %99 : vector<10x160xf32>
    %c0_51 = arith.constant 0 : index
    %c0_52 = arith.constant 0 : index
    %101 = vector.load %arg5[%c0_51, %c0_52] : memref<1x160xf32, #tpu.memory_space<vmem>>, vector<1x160xf32>
    %102 = vector.broadcast %101 : vector<1x160xf32> to vector<10x160xf32>
    %103 = arith.addf %100, %102 : vector<10x160xf32>
    %cst_53 = arith.constant 0.000000e+00 : f32
    %104 = vector.broadcast %cst_53 : f32 to vector<10x160xf32>
    %105 = arith.maximumf %103, %104 : vector<10x160xf32>
    %106 = tpu.iota {dimensions = array<i32: 0>} : vector<5x10xi32>
    %107 = tpu.iota {dimensions = array<i32: 1>} : vector<5x10xi32>
    %c2_i32_54 = arith.constant 2 : i32
    %108 = vector.broadcast %c2_i32_54 : i32 to vector<5x10xi32>
    %109 = arith.muli %108, %106 : vector<5x10xi32>
    %c0_i32_55 = arith.constant 0 : i32
    %110 = vector.broadcast %c0_i32_55 : i32 to vector<5x10xi32>
    %111 = arith.addi %109, %110 : vector<5x10xi32>
    %112 = arith.cmpi eq, %107, %111 : vector<5x10xi32>
    %113 = arith.extui %112 : vector<5x10xi1> to vector<5x10xi32>
    %114 = arith.sitofp %113 : vector<5x10xi32> to vector<5x10xf32>
    %cst_56 = arith.constant dense<0.000000e+00> : vector<5x160xf32>
    %115 = tpu.matmul %114, %105, %cst_56 {dimension_numbers = #tpu.dot_dimension_numbers<[1], [0], [0], [1], [0, 0, 1, 1], [], []>} : vector<5x10xf32>, vector<10x160xf32>, vector<5x160xf32> -> vector<5x160xf32>
    %116 = tpu.iota {dimensions = array<i32: 0>} : vector<5x10xi32>
    %117 = tpu.iota {dimensions = array<i32: 1>} : vector<5x10xi32>
    %c2_i32_57 = arith.constant 2 : i32
    %118 = vector.broadcast %c2_i32_57 : i32 to vector<5x10xi32>
    %119 = arith.muli %118, %116 : vector<5x10xi32>
    %c1_i32_58 = arith.constant 1 : i32
    %120 = vector.broadcast %c1_i32_58 : i32 to vector<5x10xi32>
    %121 = arith.addi %119, %120 : vector<5x10xi32>
    %122 = arith.cmpi eq, %117, %121 : vector<5x10xi32>
    %123 = arith.extui %122 : vector<5x10xi1> to vector<5x10xi32>
    %124 = arith.sitofp %123 : vector<5x10xi32> to vector<5x10xf32>
    %cst_59 = arith.constant dense<0.000000e+00> : vector<5x160xf32>
    %125 = tpu.matmul %124, %105, %cst_59 {dimension_numbers = #tpu.dot_dimension_numbers<[1], [0], [0], [1], [0, 0, 1, 1], [], []>} : vector<5x10xf32>, vector<10x160xf32>, vector<5x160xf32> -> vector<5x160xf32>
    %126 = arith.maximumf %115, %125 : vector<5x160xf32>
    %127 = tpu.iota {dimensions = array<i32: 0>} : vector<160x80xi32>
    %128 = tpu.iota {dimensions = array<i32: 1>} : vector<160x80xi32>
    %c2_i32_60 = arith.constant 2 : i32
    %129 = vector.broadcast %c2_i32_60 : i32 to vector<160x80xi32>
    %130 = arith.muli %129, %128 : vector<160x80xi32>
    %c0_i32_61 = arith.constant 0 : i32
    %131 = vector.broadcast %c0_i32_61 : i32 to vector<160x80xi32>
    %132 = arith.addi %130, %131 : vector<160x80xi32>
    %133 = arith.cmpi eq, %127, %132 : vector<160x80xi32>
    %134 = arith.extui %133 : vector<160x80xi1> to vector<160x80xi32>
    %135 = arith.sitofp %134 : vector<160x80xi32> to vector<160x80xf32>
    %cst_62 = arith.constant dense<0.000000e+00> : vector<5x80xf32>
    %136 = tpu.matmul %126, %135, %cst_62 {dimension_numbers = #tpu.dot_dimension_numbers<[1], [0], [0], [1], [0, 0, 1, 1], [], []>} : vector<5x160xf32>, vector<160x80xf32>, vector<5x80xf32> -> vector<5x80xf32>
    %137 = tpu.iota {dimensions = array<i32: 0>} : vector<160x80xi32>
    %138 = tpu.iota {dimensions = array<i32: 1>} : vector<160x80xi32>
    %c2_i32_63 = arith.constant 2 : i32
    %139 = vector.broadcast %c2_i32_63 : i32 to vector<160x80xi32>
    %140 = arith.muli %139, %138 : vector<160x80xi32>
    %c1_i32_64 = arith.constant 1 : i32
    %141 = vector.broadcast %c1_i32_64 : i32 to vector<160x80xi32>
    %142 = arith.addi %140, %141 : vector<160x80xi32>
    %143 = arith.cmpi eq, %137, %142 : vector<160x80xi32>
    %144 = arith.extui %143 : vector<160x80xi1> to vector<160x80xi32>
    %145 = arith.sitofp %144 : vector<160x80xi32> to vector<160x80xf32>
    %cst_65 = arith.constant dense<0.000000e+00> : vector<5x80xf32>
    %146 = tpu.matmul %126, %145, %cst_65 {dimension_numbers = #tpu.dot_dimension_numbers<[1], [0], [0], [1], [0, 0, 1, 1], [], []>} : vector<5x160xf32>, vector<160x80xf32>, vector<5x80xf32> -> vector<5x80xf32>
    %147 = arith.maximumf %136, %146 : vector<5x80xf32>
    %cst_66 = arith.constant 0.000000e+00 : f32
    %148 = vector.broadcast %cst_66 : f32 to vector<1x120xf32>
    %149 = vector.extract_strided_slice %147 {offsets = [0, 0], sizes = [1, 80], strides = [1, 1]} : vector<5x80xf32> to vector<1x80xf32>
    %c0_67 = arith.constant 0 : index
    %c0_68 = arith.constant 0 : index
    %c0_69 = arith.constant 0 : index
    %150 = vector.load %arg6[%c0_67, %c0_68, %c0_69] : memref<5x80x120xf32, #tpu.memory_space<vmem>>, vector<1x80x120xf32>
    %151 = vector.shape_cast %150 : vector<1x80x120xf32> to vector<80x120xf32>
    %cst_70 = arith.constant dense<0.000000e+00> : vector<1x120xf32>
    %152 = tpu.matmul %149, %151, %cst_70 {dimension_numbers = #tpu.dot_dimension_numbers<[1], [0], [0], [1], [0, 0, 1, 1], [], []>} : vector<1x80xf32>, vector<80x120xf32>, vector<1x120xf32> -> vector<1x120xf32>
    %153 = arith.addf %148, %152 : vector<1x120xf32>
    %154 = vector.extract_strided_slice %147 {offsets = [1, 0], sizes = [1, 80], strides = [1, 1]} : vector<5x80xf32> to vector<1x80xf32>
    %c1_71 = arith.constant 1 : index
    %c0_72 = arith.constant 0 : index
    %c0_73 = arith.constant 0 : index
    %155 = vector.load %arg6[%c1_71, %c0_72, %c0_73] : memref<5x80x120xf32, #tpu.memory_space<vmem>>, vector<1x80x120xf32>
    %156 = vector.shape_cast %155 : vector<1x80x120xf32> to vector<80x120xf32>
    %cst_74 = arith.constant dense<0.000000e+00> : vector<1x120xf32>
    %157 = tpu.matmul %154, %156, %cst_74 {dimension_numbers = #tpu.dot_dimension_numbers<[1], [0], [0], [1], [0, 0, 1, 1], [], []>} : vector<1x80xf32>, vector<80x120xf32>, vector<1x120xf32> -> vector<1x120xf32>
    %158 = arith.addf %153, %157 : vector<1x120xf32>
    %159 = vector.extract_strided_slice %147 {offsets = [2, 0], sizes = [1, 80], strides = [1, 1]} : vector<5x80xf32> to vector<1x80xf32>
    %c2_75 = arith.constant 2 : index
    %c0_76 = arith.constant 0 : index
    %c0_77 = arith.constant 0 : index
    %160 = vector.load %arg6[%c2_75, %c0_76, %c0_77] : memref<5x80x120xf32, #tpu.memory_space<vmem>>, vector<1x80x120xf32>
    %161 = vector.shape_cast %160 : vector<1x80x120xf32> to vector<80x120xf32>
    %cst_78 = arith.constant dense<0.000000e+00> : vector<1x120xf32>
    %162 = tpu.matmul %159, %161, %cst_78 {dimension_numbers = #tpu.dot_dimension_numbers<[1], [0], [0], [1], [0, 0, 1, 1], [], []>} : vector<1x80xf32>, vector<80x120xf32>, vector<1x120xf32> -> vector<1x120xf32>
    %163 = arith.addf %158, %162 : vector<1x120xf32>
    %164 = vector.extract_strided_slice %147 {offsets = [3, 0], sizes = [1, 80], strides = [1, 1]} : vector<5x80xf32> to vector<1x80xf32>
    %c3_79 = arith.constant 3 : index
    %c0_80 = arith.constant 0 : index
    %c0_81 = arith.constant 0 : index
    %165 = vector.load %arg6[%c3_79, %c0_80, %c0_81] : memref<5x80x120xf32, #tpu.memory_space<vmem>>, vector<1x80x120xf32>
    %166 = vector.shape_cast %165 : vector<1x80x120xf32> to vector<80x120xf32>
    %cst_82 = arith.constant dense<0.000000e+00> : vector<1x120xf32>
    %167 = tpu.matmul %164, %166, %cst_82 {dimension_numbers = #tpu.dot_dimension_numbers<[1], [0], [0], [1], [0, 0, 1, 1], [], []>} : vector<1x80xf32>, vector<80x120xf32>, vector<1x120xf32> -> vector<1x120xf32>
    %168 = arith.addf %163, %167 : vector<1x120xf32>
    %169 = vector.extract_strided_slice %147 {offsets = [4, 0], sizes = [1, 80], strides = [1, 1]} : vector<5x80xf32> to vector<1x80xf32>
    %c4_83 = arith.constant 4 : index
    %c0_84 = arith.constant 0 : index
    %c0_85 = arith.constant 0 : index
    %170 = vector.load %arg6[%c4_83, %c0_84, %c0_85] : memref<5x80x120xf32, #tpu.memory_space<vmem>>, vector<1x80x120xf32>
    %171 = vector.shape_cast %170 : vector<1x80x120xf32> to vector<80x120xf32>
    %cst_86 = arith.constant dense<0.000000e+00> : vector<1x120xf32>
    %172 = tpu.matmul %169, %171, %cst_86 {dimension_numbers = #tpu.dot_dimension_numbers<[1], [0], [0], [1], [0, 0, 1, 1], [], []>} : vector<1x80xf32>, vector<80x120xf32>, vector<1x120xf32> -> vector<1x120xf32>
    %173 = arith.addf %168, %172 : vector<1x120xf32>
    %c0_87 = arith.constant 0 : index
    %c0_88 = arith.constant 0 : index
    %174 = vector.load %arg7[%c0_87, %c0_88] : memref<1x120xf32, #tpu.memory_space<vmem>>, vector<1x120xf32>
    %175 = arith.addf %173, %174 : vector<1x120xf32>
    %cst_89 = arith.constant 0.000000e+00 : f32
    %176 = vector.broadcast %cst_89 : f32 to vector<1x120xf32>
    %177 = arith.maximumf %175, %176 : vector<1x120xf32>
    %c0_90 = arith.constant 0 : index
    %c0_91 = arith.constant 0 : index
    %178 = vector.load %arg8[%c0_90, %c0_91] : memref<120x84xf32, #tpu.memory_space<vmem>>, vector<120x84xf32>
    %cst_92 = arith.constant dense<0.000000e+00> : vector<1x84xf32>
    %179 = tpu.matmul %177, %178, %cst_92 {dimension_numbers = #tpu.dot_dimension_numbers<[1], [0], [0], [1], [0, 0, 1, 1], [], []>} : vector<1x120xf32>, vector<120x84xf32>, vector<1x84xf32> -> vector<1x84xf32>
    %c0_93 = arith.constant 0 : index
    %c0_94 = arith.constant 0 : index
    %180 = vector.load %arg9[%c0_93, %c0_94] : memref<1x84xf32, #tpu.memory_space<vmem>>, vector<1x84xf32>
    %181 = arith.addf %179, %180 : vector<1x84xf32>
    %cst_95 = arith.constant 0.000000e+00 : f32
    %182 = vector.broadcast %cst_95 : f32 to vector<1x84xf32>
    %183 = arith.maximumf %181, %182 : vector<1x84xf32>
    %c0_96 = arith.constant 0 : index
    %c0_97 = arith.constant 0 : index
    %184 = vector.load %arg10[%c0_96, %c0_97] : memref<84x128xf32, #tpu.memory_space<vmem>>, vector<84x128xf32>
    %cst_98 = arith.constant dense<0.000000e+00> : vector<1x128xf32>
    %185 = tpu.matmul %183, %184, %cst_98 {dimension_numbers = #tpu.dot_dimension_numbers<[1], [0], [0], [1], [0, 0, 1, 1], [], []>} : vector<1x84xf32>, vector<84x128xf32>, vector<1x128xf32> -> vector<1x128xf32>
    %c0_99 = arith.constant 0 : index
    %c0_100 = arith.constant 0 : index
    %186 = vector.load %arg11[%c0_99, %c0_100] : memref<1x128xf32, #tpu.memory_space<vmem>>, vector<1x128xf32>
    %187 = arith.addf %185, %186 : vector<1x128xf32>
    %c0_101 = arith.constant 0 : index
    %c0_102 = arith.constant 0 : index
    %c0_103 = arith.constant 0 : index
    %188 = vector.load %arg12[%c0_101, %c0_102, %c0_103] : memref<1x1x128xf32, #tpu.memory_space<vmem>>, vector<1x1x128xf32>
    %189 = vector.shape_cast %188 : vector<1x1x128xf32> to vector<1x128xf32>
    %190 = vector.shape_cast %187 : vector<1x128xf32> to vector<1x1x128xf32>
    tpu.vector_store %arg12[%c0_101, %c0_102, %c0_103], %190 {strides = array<i32>} : memref<1x1x128xf32, #tpu.memory_space<vmem>>, vector<1x1x128xf32>,
    return
  }
  func.func @transform_0(%arg0: i32) -> (i32, i32, i32) {
    %c0_i32 = arith.constant 0 : i32
    %c0_i32_0 = arith.constant 0 : i32
    %c0_i32_1 = arith.constant 0 : i32
    return %arg0, %c0_i32, %c0_i32_0 : i32, i32, i32
  }
  func.func @transform_1(%arg0: i32) -> (i32, i32, i32) {
    %c0_i32 = arith.constant 0 : i32
    %c0_i32_0 = arith.constant 0 : i32
    %c0_i32_1 = arith.constant 0 : i32
    %c0_i32_2 = arith.constant 0 : i32
    return %c0_i32, %c0_i32_0, %c0_i32_1 : i32, i32, i32
  }
  func.func @transform_2(%arg0: i32) -> (i32, i32) {
    %c0_i32 = arith.constant 0 : i32
    %c0_i32_0 = arith.constant 0 : i32
    %c0_i32_1 = arith.constant 0 : i32
    return %c0_i32, %c0_i32_0 : i32, i32
  }
  func.func @transform_3(%arg0: i32) -> (i32, i32, i32) {
    %c0_i32 = arith.constant 0 : i32
    %c0_i32_0 = arith.constant 0 : i32
    %c0_i32_1 = arith.constant 0 : i32
    %c0_i32_2 = arith.constant 0 : i32
    return %c0_i32, %c0_i32_0, %c0_i32_1 : i32, i32, i32
  }
  func.func @transform_4(%arg0: i32) -> (i32, i32) {
    %c0_i32 = arith.constant 0 : i32
    %c0_i32_0 = arith.constant 0 : i32
    %c0_i32_1 = arith.constant 0 : i32
    return %c0_i32, %c0_i32_0 : i32, i32
  }
  func.func @transform_5(%arg0: i32) -> (i32, i32, i32) {
    %c0_i32 = arith.constant 0 : i32
    %c0_i32_0 = arith.constant 0 : i32
    %c0_i32_1 = arith.constant 0 : i32
    %c0_i32_2 = arith.constant 0 : i32
    return %c0_i32, %c0_i32_0, %c0_i32_1 : i32, i32, i32
  }
  func.func @transform_6(%arg0: i32) -> (i32, i32) {
    %c0_i32 = arith.constant 0 : i32
    %c0_i32_0 = arith.constant 0 : i32
    %c0_i32_1 = arith.constant 0 : i32
    return %c0_i32, %c0_i32_0 : i32, i32
  }
  func.func @transform_7(%arg0: i32) -> (i32, i32) {
    %c0_i32 = arith.constant 0 : i32
    %c0_i32_0 = arith.constant 0 : i32
    %c0_i32_1 = arith.constant 0 : i32
    return %c0_i32, %c0_i32_0 : i32, i32
  }
  func.func @transform_8(%arg0: i32) -> (i32, i32) {
    %c0_i32 = arith.constant 0 : i32
    %c0_i32_0 = arith.constant 0 : i32
    %c0_i32_1 = arith.constant 0 : i32
    return %c0_i32, %c0_i32_0 : i32, i32
  }
  func.func @transform_9(%arg0: i32) -> (i32, i32) {
    %c0_i32 = arith.constant 0 : i32
    %c0_i32_0 = arith.constant 0 : i32
    %c0_i32_1 = arith.constant 0 : i32
    return %c0_i32, %c0_i32_0 : i32, i32
  }
  func.func @transform_10(%arg0: i32) -> (i32, i32) {
    %c0_i32 = arith.constant 0 : i32
    %c0_i32_0 = arith.constant 0 : i32
    %c0_i32_1 = arith.constant 0 : i32
    return %c0_i32, %c0_i32_0 : i32, i32
  }
  func.func @transform_11(%arg0: i32) -> (i32, i32, i32) {
    %c0_i32 = arith.constant 0 : i32
    %c0_i32_0 = arith.constant 0 : i32
    %c0_i32_1 = arith.constant 0 : i32
    return %arg0, %c0_i32, %c0_i32_0 : i32, i32, i32
  }
}

</mosaic_0001>

<bundles_post_ra>
// kernel: lenet_forward.1
= control target key start
LH: loop header
LB: loop body
LE: loop exit
PB: predicated region body
PF: predicated region fallthrough
CT: control target
= control target key end

     0   :  { %16 = vsyncpa [#allocation3], 0  ;;  %s6267_s0 = inlined_call_operand.vmem [shape: f32[2,32,96], index: 0, kind: input, shape index: {}]   ;;  %s6268_s1 = inlined_call_operand.vmem [shape: f32[5,96,168], index: 1, kind: input, shape index: {}]   ;;  %s6269_s2 = inlined_call_operand.vmem [shape: f32[1,168], index: 2, kind: input, shape index: {}]   ;;  %s6270_s3 = inlined_call_operand.vmem [shape: f32[5,84,160], index: 3, kind: input, shape index: {}]   ;;  %s6271_s4 = inlined_call_operand.vmem [shape: f32[1,160], index: 4, kind: input, shape index: {}]   ;;  %s6272_s5 = inlined_call_operand.vmem [shape: f32[5,80,120], index: 5, kind: input, shape index: {}]   ;;  %s6273_s6 = inlined_call_operand.vmem [shape: f32[1,120], index: 6, kind: input, shape index: {}]   ;;  %s6274_s7 = inlined_call_operand.vmem [shape: f32[120,84], index: 7, kind: input, shape index: {}]   ;;  %s6275_s8 = inlined_call_operand.vmem [shape: f32[1,84], index: 8, kind: input, shape index: {}]   ;;  %s6276_s9 = inlined_call_operand.vmem [shape: f32[84,128], index: 9, kind: input, shape index: {}]   ;;  %s6277_s10 = inlined_call_operand.vmem [shape: f32[1,128], index: 10, kind: input, shape index: {}]   ;;  %s6278_s11 = inlined_call_operand.hbm [shape: f32[2,1,128], index: 11, kind: output, shape index: {}]  }
   0x1   :  { %18 = vsyncpa [#allocation3 + $0x1], 0  ;;  %s4554_s17 = smov 0   ;;  %s4556_s18 = smov 0  }
   0x2   :  { %s4558_s19 = smov 0   ;;  %s4560_s20 = smov 0  }
   0x3 LB: > { %6295 = sst [smem:[#allocation5_spill]] %s4481_s19  ;;  %s4575_s21 = sadd.s32 4294967295, %s4485_s20   ;;  %s4485_s20 = sphi %s4560_s20, %s6370_s20   ;;  %s4481_s19 = sphi %s4558_s19, %s6369_s19   ;;  %s4477_s18 = sphi %s4556_s18, %s6368_s18   ;;  %s4473_s17 = sphi %s4554_s17, %s6367_s17  }
   0x4   : > { %s3161_s22 = sadd.s32 4294967294, %s4485_s20   ;;  %s4579_s23 = sadd.s32 1, %s4485_s20  }
   0x5   : > { %s267_s24 = sadd.s32 1, %s4481_s19  ;;  %s264_s25 = ssub.s32 %s4485_s20, %s4579_s23 }
   0x6   : > { %p277_p0 = scmp.ne.s32.totalorder %s4481_s19, %s4477_s18  ;;  %p265_p1 = scmp.eq.s32.totalorder %s264_s25, 0 }
   0x7   : > { %p278_p2 = scmp.eq.s32.totalorder %s4575_s21, 1  ;;  %p283_p3 = scmp.ne.s32.totalorder %s4477_s18, %s4473_s17 }
   0x8   : > { %p284_p4 = scmp.eq.s32.totalorder %s3161_s22, 1  ;;  %p3164_p7 = scmp.ge.s32.totalorder %s4485_s20, 1 }
   0x9   : > { %s4590_s26 = scalar_select %p265_p1, %s4481_s19, %s267_s24  }
   0xa   : > { %p4592_p5 = por %p278_p2, %p277_p0  ;;  %p4596_p6 = por %p284_p4, %p283_p3 }
   0xb   : > { %6296 = sst [smem:[#allocation6_spill]] %s4590_s26  ;;  %p340_p8 = scmp.lt.s32.totalorder %s4485_s20, 3 }
   0xd   : > { %p341_p9 = pnand %p3164_p7, %p340_p8 }
   0xe   : > { %v3168_v0 = vld [vmem:[%s6268_s1 + $0xc8] sm:$0xff] (!%p341_p9)  ;;  %v3170_v1 = vld [vmem:[%s6268_s1 + $0xd8] sm:$0xff] (!%p341_p9)  ;;  %v3167_v2 = vld [vmem:[%s6268_s1 + $0xc0] sm:$0xff] (!%p341_p9)  ;;  %p379_p10 = scmp.lt.s32.totalorder (!%p341_p9), %s4575_s21, 1  ;;  %v4487_v7 = vmov (!%p341_p9), 0.0   ;;  %vm6281_vm0 = vcmask (!%p341_p9), 1044480  }
   0xf   : > { %344 = sbr.rel (%p341_p9) target bundleno = 2352 (0x930), region = 64  ;;  %v3847_v3 = vpack.c.bf16 (!%p341_p9), %v3170_v1, %v3168_v0  ;;  %v3169_v4 = vld [vmem:[%s6268_s1 + $0xd0] sm:$0xff] (!%p341_p9)  ;;  %v3172_v5 = vld [vmem:[%s6268_s1 + $0xe8] sm:$0xff] (!%p341_p9)  ;;  %v3174_v6 = vld [vmem:[%s6268_s1 + $0xf8] sm:$0xff] (!%p341_p9)  ;;  %522 = vmatprep.mubr.f32.mxu0 (!%p341_p9), %v4487_v7  ;;  %1176 = vmatprep.mubr.f32.mxu1 (!%p341_p9), %v4487_v7  ;;  %vm6284_vm1 = vcmask (!%p341_p9), 1043456   ;;  %vm6283_vm2 = vcmask (!%p341_p9), 1046528  }
  0x10   : > { %v3849_v8 = vpack.c.bf16 (!%p341_p9), %v3169_v4, %v3167_v2  ;;  %v3851_v9 = vpack.c.bf16 (!%p341_p9), %v3174_v6, %v3172_v5  ;;  %v3171_v10 = vld [vmem:[%s6268_s1 + $0xe0] sm:$0xff] (!%p341_p9)  ;;  %v3173_v11 = vld [vmem:[%s6268_s1 + $0xf0] sm:$0xff] (!%p341_p9)  ;;  %v3176_v12 = vld [vmem:[%s6268_s1 + $0x108] sm:$0xff] (!%p341_p9)  ;;  %vm449_vm3 = vcmask (!%p341_p9), 785408   ;;  %vm6282_vm4 = vcmask (!%p341_p9), 1045504   ;;  %s377_s15 = sand.u32 (!%p341_p9), 1, %s4477_s18  }
  0x11   : > { %3848 = vmatprep.subr.bf16.mxu0 (!%p341_p9), %v3847_v3  ;;  %v3178_v13 = vld [vmem:[%s6268_s1 + $0x118] sm:$0xff] (!%p341_p9)  ;;  %v3853_v14 = vpack.c.bf16 (!%p341_p9), %v3173_v11, %v3171_v10  ;;  %v3175_v16 = vld [vmem:[%s6268_s1 + $0x100] sm:$0xff] (!%p341_p9)  ;;  %v3177_v17 = vld [vmem:[%s6268_s1 + $0x110] sm:$0xff] (!%p341_p9)  ;;  %vm6280_vm5 = vmmov (!%p341_p9), 1   ;;  %vm1099_vm8 = vcmask (!%p341_p9), 228352   ;;  %s3587_s25 = sshll.u32 (!%p341_p9), %s4575_s21, 4 }
  0x12   : > { %3850 = vmatpush1.bf16.msra.mxu0 (!%p341_p9), %v3849_v8  ;;  %v3855_v15 = vpack.c.bf16 (!%p341_p9), %v3178_v13, %v3176_v12  ;;  %v3180_v18 = vld [vmem:[%s6268_s1 + $0x128] sm:$0xff] (!%p341_p9)  ;;  %v3182_v19 = vld [vmem:[%s6268_s1 + $0x138] sm:$0xff] (!%p341_p9)  ;;  %v3857_v20 = vpack.c.bf16 (!%p341_p9), %v3177_v17, %v3175_v16  ;;  %v3179_v23 = vld [vmem:[%s6268_s1 + $0x120] sm:$0xff] (!%p341_p9)  ;;  %s378_s29 = scalar_lea.vmem (!%p341_p9), [#allocation2], %s377_s15  ;;  %s6225_s13 = scalar_lea.hbm (!%p341_p9), %s6278_s11, %s3587_s25 }
  0x13   : > { %3852 = vmatprep.subr.bf16.mxu0 (!%p341_p9), %v3851_v9  ;;  %v3859_v22 = vpack.c.bf16 (!%p341_p9), %v3182_v19, %v3180_v18  ;;  %v3181_v24 = vld [vmem:[%s6268_s1 + $0x130] sm:$0xff] (!%p341_p9)  ;;  %v3184_v27 = vld [vmem:[%s6268_s1 + $0x148] sm:$0xff] (!%p341_p9)  ;;  %v3186_v28 = vld [vmem:[%s6268_s1 + $0x158] sm:$0xff] (!%p341_p9) }
  0x14   : > { %v3861_v32 = vpack.c.bf16 (!%p341_p9), %v3181_v24, %v3179_v23  ;;  %v3863_v33 = vpack.c.bf16 (!%p341_p9), %v3186_v28, %v3184_v27  ;;  %v3183_v34 = vld [vmem:[%s6268_s1 + $0x140] sm:$0xff] (!%p341_p9)  ;;  %v3185_v35 = vld [vmem:[%s6268_s1 + $0x150] sm:$0xff] (!%p341_p9)  ;;  %v3188_v39 = vld [vmem:[%s6268_s1 + $0x168] sm:$0xff] (!%p341_p9) }
  0x15   : > { %v3190_v40 = vld [vmem:[%s6268_s1 + $0x178] sm:$0xff] (!%p341_p9)  ;;  %v3865_v43 = vpack.c.bf16 (!%p341_p9), %v3185_v35, %v3183_v34  ;;  %v3187_v46 = vld [vmem:[%s6268_s1 + $0x160] sm:$0xff] (!%p341_p9)  ;;  %v3189_v47 = vld [vmem:[%s6268_s1 + $0x170] sm:$0xff] (!%p341_p9) }
  0x16   : > { %s380_s24 = scalar_select %p379_p10, %s4575_s21, 1  ;;  %3854 = vmatpush1.bf16.msra.mxu0 %v3853_v14  ;;  %v3867_v45 = vpack.c.bf16 %v3190_v40, %v3188_v39  ;;  %v389_v50 = vld [vmem:[%s6268_s1 + $0x8] sm:$0xff]  ;;  %v391_v51 = vld [vmem:[%s6268_s1 + $0x18] sm:$0xff]  ;;  %v3869_v55 = vpack.c.bf16 %v3189_v47, %v3187_v46  ;;  %v388_v59 = vld [vmem:[%s6268_s1] sm:$0xff] }
  0x17   : > { %3856 = vmatprep.subr.bf16.mxu0 %v3855_v15  ;;  %v3871_v58 = vpack.c.bf16 %v391_v51, %v389_v50  ;;  %v390_v60 = vld [vmem:[%s6268_s1 + $0x10] sm:$0xff]  ;;  %v393_v62 = vld [vmem:[%s6268_s1 + $0x28] sm:$0xff]  ;;  %v395_v63 = vld [vmem:[%s6268_s1 + $0x38] sm:$0xff]  ;;  %s4493_s21 = smov [#allocation2]  }
  0x18   : > { %s3590_s30 = sshll.u32 %s380_s24, 5  ;;  %v3873_v1 = vpack.c.bf16 %v390_v60, %v388_v59  ;;  %v3875_v3 = vpack.c.bf16 %v395_v63, %v393_v62  ;;  %v392_v4 = vld [vmem:[%s6268_s1 + $0x20] sm:$0xff]  ;;  %v394_v5 = vld [vmem:[%s6268_s1 + $0x30] sm:$0xff]  ;;  %v397_v6 = vld [vmem:[%s6268_s1 + $0x48] sm:$0xff]  ;;  %s3106_s24 = sshll.u32 %s378_s29, 4  ;;  %s6227_s24 = int_to_ptr.vmem [resolvable:$true] %s3106_s24 }
  0x19   : > { %s4645_s26 = scalar_lea.vmem %s6267_s0, %s3590_s30  ;;  %v399_v8 = vld [vmem:[%s6268_s1 + $0x58] sm:$0xff]  ;;  %v3877_v9 = vpack.c.bf16 %v394_v5, %v392_v4  ;;  %v396_v13 = vld [vmem:[%s6268_s1 + $0x40] sm:$0xff]  ;;  %v398_v14 = vld [vmem:[%s6268_s1 + $0x50] sm:$0xff]  ;;  %s3094_s30 = scalar_lea.sflag [#allocation3], %s377_s15 }
  0x1a   : > { %v4654_v21 = vld [vmem:[%s4645_s26] sm:$0xff]  ;;  %v4663_v25 = vld [vmem:[%s4645_s26 + $0x8] sm:$0xff]  ;;  %3858 = vmatpush1.bf16.msra.mxu0 %v3857_v20  ;;  %v4682_v36 = vld [vmem:[%s4645_s26 + $0x10] sm:$0xff]  ;;  %v3879_v12 = vpack.c.bf16 %v399_v8, %v397_v6  ;;  %v3881_v17 = vpack.c.bf16 %v398_v14, %v396_v13  ;;  %s4423_s14 = scalar_lea.vmem %s6227_s24, 16  ;;  %s4427_s19 = sshll.u32 %s4493_s21, 4  ;;  %s4428_s19 = int_to_ptr.vmem [resolvable:$false] %s4427_s19 }
  0x1b   : > { %v808_v26 = vrot.slane %v4654_v21, 3  ;;  %v809_v29 = vrot.slane %v4663_v25, 3  ;;  %v946_v30 = vrot.slane %v4654_v21, 4  ;;  %v947_v31 = vrot.slane %v4663_v25, 4  ;;  %3860 = vmatprep.subr.bf16.mxu0 %v3859_v22  ;;  %v4699_v44 = vld [vmem:[%s4645_s26 + $0x18] sm:$0xff]  ;;  %v401_v15 = vld [vmem:[%s6268_s1 + $0x68] sm:$0xff]  ;;  %vm5098_vm6 = vmpackc.low %vm6284_vm1, %vm6280_vm5  ;;  %p4424_p11 = scmp.ne.s32.totalorder %s6227_s24, %s4423_s14  ;;  %p4430_p0 = scmp.lt.s32.totalorder %s6227_s24, %s4428_s19 }
  0x1c   : > { %v811_v41 = vrot.slane %v4682_v36, 3  ;;  %v949_v42 = vrot.slane %v4682_v36, 4  ;;  %v813_v49 = vrot.slane %v4699_v44, 3  ;;  %v951_v54 = vrot.slane %v4699_v44, 4  ;;  %v403_v16 = vld [vmem:[%s6268_s1 + $0x78] sm:$0xff]  ;;  %v400_v20 = vld [vmem:[%s6268_s1 + $0x60] sm:$0xff] }
  0x1d   : > { %v4685_v37 = vsel %vm6281_vm0, %v808_v26, %v809_v29  ;;  %v4688_v38 = vsel %vm6284_vm1, %v946_v30, %v947_v31  ;;  %v442_v56 = vrot.slane %v4654_v21, 1  ;;  %v443_v57 = vrot.slane %v4663_v25, 1  ;;  %v402_v22 = vld [vmem:[%s6268_s1 + $0x70] sm:$0xff]  ;;  %v405_v23 = vld [vmem:[%s6268_s1 + $0x88] sm:$0xff]  ;;  %v407_v24 = vld [vmem:[%s6268_s1 + $0x98] sm:$0xff]  ;;  %p4425_p12 = pnand %p4424_p11, %p4592_p5  ;;  %s4429_s16 = scalar_lea.vmem %s4428_s19, 32 }
  0x1e   : > { %3862 = vmatpush1.bf16.msra.mxu0 %v3861_v32  ;;  %v4708_v48 = vsel %vm6281_vm0, %v809_v29, %v811_v41  ;;  %v4718_v52 = vsel %vm6284_vm1, %v947_v31, %v949_v42  ;;  %v4723_v53 = vsel %vm6281_vm0, %v811_v41, %v813_v49  ;;  %v4737_v61 = vsel %vm6284_vm1, %v949_v42, %v951_v54  ;;  %v404_v28 = vld [vmem:[%s6268_s1 + $0x80] sm:$0xff]  ;;  %v406_v29 = vld [vmem:[%s6268_s1 + $0x90] sm:$0xff]  ;;  %v409_v30 = vld [vmem:[%s6268_s1 + $0xa8] sm:$0xff]  ;;  %p4431_p1 = scmp.lt.s32.totalorder %s4429_s16, %s4423_s14 }
  0x1f   : > { %3864 = vmatprep.subr.bf16.mxu0 %v3863_v33  ;;  %v444_v0 = vsel %vm6283_vm2, %v442_v56, %v443_v57  ;;  %v445_v2 = vrot.slane %v4682_v36, 1  ;;  %v447_v11 = vrot.slane %v4699_v44, 1  ;;  %v3883_v19 = vpack.c.bf16 %v403_v16, %v401_v15  ;;  %v411_v31 = vld [vmem:[%s6268_s1 + $0xb8] sm:$0xff]  ;;  %v408_v34 = vld [vmem:[%s6268_s1 + $0xa0] sm:$0xff]  ;;  %v410_v35 = vld [vmem:[%s6268_s1 + $0xb0] sm:$0xff]  ;;  %p4426_p13 = pneg %p4425_p12 }
  0x20   : > { %v3885_v26 = vpack.c.bf16 %v402_v22, %v400_v20  ;;  %v3887_v27 = vpack.c.bf16 %v407_v24, %v405_v23  ;;  %v3889_v32 = vpack.c.bf16 %v406_v29, %v404_v28  ;;  %v3891_v33 = vpack.c.bf16 %v411_v31, %v409_v30  ;;  %v3200_v39 = vld [vmem:[%s6268_s1 + $0x188] sm:$0xff]  ;;  %v3202_v40 = vld [vmem:[%s6268_s1 + $0x198] sm:$0xff]  ;;  %v3205_v56 = vld [vmem:[%s6268_s1 + $0x1b0] sm:$0xff]  ;;  %p4432_p2 = por %p4431_p1, %p4430_p0 }
  0x21   : > { %v446_v10 = vsel %vm6283_vm2, %v443_v57, %v445_v2  ;;  %v448_v18 = vsel %vm6283_vm2, %v445_v2, %v447_v11  ;;  %v3893_v41 = vpack.c.bf16 %v410_v35, %v408_v34  ;;  %v3895_v42 = vpack.c.bf16 %v3202_v40, %v3200_v39  ;;  %v3204_v46 = vld [vmem:[%s6268_s1 + $0x1a8] sm:$0xff]  ;;  %v3206_v47 = vld [vmem:[%s6268_s1 + $0x1b8] sm:$0xff]  ;;  %v3207_v62 = vld [vmem:[%s6268_s1 + $0x1c0] sm:$0xff] }
  0x22   : > { %3866 = vmatpush1.bf16.msra.mxu0 %v3865_v43  ;;  %v3199_v43 = vld [vmem:[%s6268_s1 + $0x180] sm:$0xff]  ;;  %v3899_v51 = vpack.c.bf16 %v3206_v47, %v3204_v46  ;;  %v3208_v57 = vld [vmem:[%s6268_s1 + $0x1c8] sm:$0xff]  ;;  %v3209_v63 = vld [vmem:[%s6268_s1 + $0x1d0] sm:$0xff]  ;;  %v670_v23 = vrot.slane %v4654_v21, 2  ;;  %v671_v24 = vrot.slane %v4663_v25, 2  ;;  %v673_v31 = vrot.slane %v4682_v36, 2  ;;  %p4433_p3 = pnand %p4432_p2, %p4426_p13 }
  0x23   : > { %3868 = vmatprep.subr.bf16.mxu0 %v3867_v45  ;;  %v3201_v45 = vld [vmem:[%s6268_s1 + $0x190] sm:$0xff]  ;;  %v3905_v2 = vpack.c.bf16 %v3209_v63, %v3207_v62  ;;  %v3211_v4 = vld [vmem:[%s6268_s1 + $0x1e0] sm:$0xff]  ;;  %v3216_v6 = vld [vmem:[%s6268_s1 + $0x208] sm:$0xff] }
  0x24   : > { %v3897_v50 = vpack.c.bf16 %v3201_v45, %v3199_v43  ;;  %v3213_v5 = vld [vmem:[%s6268_s1 + $0x1f0] sm:$0xff]  ;;  %v3218_v8 = vld [vmem:[%s6268_s1 + $0x218] sm:$0xff]  ;;  %v3220_v13 = vld [vmem:[%s6268_s1 + $0x228] sm:$0xff]  ;;  %v674_v40 = vsel %vm6282_vm4, %v671_v24, %v673_v31 }
  0x25   : > { %v3222_v14 = vld [vmem:[%s6268_s1 + $0x238] sm:$0xff]  ;;  %v3229_v28 = vld [vmem:[%s6268_s1 + $0x250] sm:$0xff]  ;;  %v3232_v29 = vld [vmem:[%s6268_s1 + $0x268] sm:$0xff] }
  0x26   : > { %3870 = vmatpush1.bf16.msra.mxu0 %v3869_v55  ;;  %v3203_v55 = vld [vmem:[%s6268_s1 + $0x1a0] sm:$0xff]  ;;  %v3915_v16 = vpack.c.bf16 %v3222_v14, %v3220_v13  ;;  %v3230_v20 = vld [vmem:[%s6268_s1 + $0x258] sm:$0xff]  ;;  %v3233_v34 = vld [vmem:[%s6268_s1 + $0x270] sm:$0xff] }
  0x27   : > { %3872 = vmatprep.subr.bf16.mxu0 %v3871_v58  ;;  %v3210_v58 = vld [vmem:[%s6268_s1 + $0x1d8] sm:$0xff]  ;;  %v3901_v59 = vpack.c.bf16 %v3205_v56, %v3203_v55  ;;  %v3236_v35 = vld [vmem:[%s6268_s1 + $0x288] sm:$0xff]  ;;  %v3235_v43 = vld [vmem:[%s6268_s1 + $0x280] sm:$0xff] }
  0x28   : > { %v3903_v60 = vpack.c.bf16 %v3210_v58, %v3208_v57  ;;  %v3238_v39 = vld [vmem:[%s6268_s1 + $0x298] sm:$0xff]  ;;  %v3237_v45 = vld [vmem:[%s6268_s1 + $0x290] sm:$0xff]  ;;  %v3240_v46 = vld [vmem:[%s6268_s1 + $0x2a8] sm:$0xff] }
  0x29   : > { %3191 = vmatmul.mubr.msk.f32.vlgmr.msra.gmra.mrb[0].mxu0 %vm449_vm3, %v444_v0  ;;  %v3212_v0 = vld [vmem:[%s6268_s1 + $0x1e8] sm:$0xff]  ;;  %v3242_v47 = vld [vmem:[%s6268_s1 + $0x2b8] sm:$0xff]  ;;  %v3239_v56 = vld [vmem:[%s6268_s1 + $0x2a0] sm:$0xff] }
  0x2a   : > { %3874 = vmatpush1.bf16.msra.mxu0 %v3873_v1  ;;  %528 = vmatprep.mubr.f32.mxu0 %v4487_v7  ;;  %v3214_v1 = vld [vmem:[%s6268_s1 + $0x1f8] sm:$0xff]  ;;  %v3931_v55 = vpack.c.bf16 %v3242_v47, %v3240_v46  ;;  %v3241_v57 = vld [vmem:[%s6268_s1 + $0x2b0] sm:$0xff]  ;;  %v3244_v58 = vld [vmem:[%s6268_s1 + $0x2c8] sm:$0xff] }
  0x2b   : > { %3876 = vmatprep.subr.bf16.mxu0 %v3875_v3  ;;  %v3907_v3 = vpack.c.bf16 %v3214_v1, %v3212_v0  ;;  %v3243_v63 = vld [vmem:[%s6268_s1 + $0x2c0] sm:$0xff]  ;;  %v3245_v0 = vld [vmem:[%s6268_s1 + $0x2d0] sm:$0xff]  ;;  %v3248_v1 = vld [vmem:[%s6268_s1 + $0x2e8] sm:$0xff] }
  0x2c   : > { %v3257_v13 = vld [vmem:[%s6268_s1 + $0x310] sm:$0xff]  ;;  %v3260_v14 = vld [vmem:[%s6268_s1 + $0x328] sm:$0xff] }
  0x2d   : > { %3192 = vmatmul.mubr.msk.f32.gmra.mrb[2].mxu0 %vm449_vm3, %v446_v10  ;;  %v3911_v10 = vpack.c.bf16 %v3218_v8, %v3216_v6  ;;  %v3249_v6 = vld [vmem:[%s6268_s1 + $0x2f0] sm:$0xff]  ;;  %v3256_v8 = vld [vmem:[%s6268_s1 + $0x308] sm:$0xff] }
  0x2e   : > { %3878 = vmatpush1.bf16.msra.mxu0 %v3877_v9  ;;  %534 = vmatprep.mubr.f32.mxu0 %v4487_v7  ;;  %v3909_v9 = vpack.c.bf16 %v3213_v5, %v3211_v4  ;;  %v3247_v5 = vld [vmem:[%s6268_s1 + $0x2e0] sm:$0xff] }
  0x2f   : > { %3880 = vmatprep.subr.bf16.mxu0 %v3879_v12  ;;  %v3217_v12 = vld [vmem:[%s6268_s1 + $0x210] sm:$0xff] }
  0x31   : > { %3193 = vmatmul.mubr.msk.f32.gmra.mrb[4].mxu0 %vm449_vm3, %v448_v18  ;;  %v3221_v18 = vld [vmem:[%s6268_s1 + $0x230] sm:$0xff] }
  0x32   : > { %3882 = vmatpush1.bf16.msra.mxu0 %v3881_v17  ;;  %540 = vmatprep.mubr.f32.mxu0 %v4487_v7  ;;  %v3219_v17 = vld [vmem:[%s6268_s1 + $0x220] sm:$0xff] }
  0x33   : > { %3884 = vmatprep.subr.bf16.mxu0 %v3883_v19  ;;  %v3228_v19 = vld [vmem:[%s6268_s1 + $0x248] sm:$0xff]  ;;  %v3917_v22 = vpack.c.bf16 %v3221_v18, %v3219_v17  ;;  %v3259_v18 = vld [vmem:[%s6268_s1 + $0x320] sm:$0xff] }
  0x35   : > { %3194 = vmatmul.mubr.msk.f32.gmra.mrb[6].mxu0 %vm449_vm3, %v447_v11  ;;  %v3215_v11 = vld [vmem:[%s6268_s1 + $0x200] sm:$0xff] }
  0x36   : > { %3886 = vmatpush1.bf16.msra.mxu0 %v3885_v26  ;;  %619 = vmatprep.mubr.f32.mxu0 %v4487_v7  ;;  %v3913_v15 = vpack.c.bf16 %v3217_v12, %v3215_v11  ;;  %v3919_v26 = vpack.c.bf16 %v3230_v20, %v3228_v19  ;;  %v3255_v12 = vld [vmem:[%s6268_s1 + $0x300] sm:$0xff]  ;;  %v3261_v19 = vld [vmem:[%s6268_s1 + $0x330] sm:$0xff]  ;;  %v3264_v20 = vld [vmem:[%s6268_s1 + $0x348] sm:$0xff] }
  0x37   : > { %3888 = vmatprep.subr.bf16.mxu0 %v3887_v27  ;;  %v3227_v27 = vld [vmem:[%s6268_s1 + $0x240] sm:$0xff] }
  0x38   : > { %v3921_v30 = vpack.c.bf16 %v3229_v28, %v3227_v27  ;;  %v3265_v27 = vld [vmem:[%s6268_s1 + $0x350] sm:$0xff]  ;;  %v3268_v28 = vld [vmem:[%s6268_s1 + $0x368] sm:$0xff] }
  0x3a   : > { %3890 = vmatpush1.bf16.msra.mxu0 %v3889_v32 }
  0x3b   : > { %3892 = vmatprep.subr.bf16.mxu0 %v3891_v33  ;;  %v3231_v33 = vld [vmem:[%s6268_s1 + $0x260] sm:$0xff] }
  0x3e   : > { %3894 = vmatpush1.bf16.msra.mxu0 %v3893_v41  ;;  %v675_v41 = vrot.slane %v4699_v44, 2 }
  0x3f   : > { %3896 = vmatprep.subr.bf16.mxu0 %v3895_v42  ;;  %v3927_v42 = vpack.c.bf16 %v3238_v39, %v3236_v35  ;;  %v3273_v35 = vld [vmem:[%s6268_s1 + $0x390] sm:$0xff]  ;;  %v3276_v39 = vld [vmem:[%s6268_s1 + $0x3a8] sm:$0xff] }
  0x41   : > { %3195 = vmatmul.mubr.msk.f32.vlgmr.msra.gmra.mrb[0].mxu0 %vm449_vm3, %v4654_v21  ;;  %v3234_v21 = vld [vmem:[%s6268_s1 + $0x278] sm:$0xff] }
  0x42   : > { %3898 = vmatpush1.bf16.msra.mxu0 %v3897_v50  ;;  %625 = vmatprep.mubr.f32.mxu0 %v4487_v7  ;;  %v3923_v32 = vpack.c.bf16 %v3234_v21, %v3232_v29  ;;  %v3929_v50 = vpack.c.bf16 %v3237_v45, %v3235_v43 }
  0x43   : > { %3900 = vmatprep.subr.bf16.mxu0 %v3899_v51  ;;  %v676_v51 = vsel %vm6282_vm4, %v673_v31, %v675_v41  ;;  %v3272_v31 = vld [vmem:[%s6268_s1 + $0x388] sm:$0xff] }
  0x45   : > { %3196 = vmatmul.mubr.msk.f32.gmra.mrb[2].mxu0 %vm449_vm3, %v4663_v25  ;;  %v672_v25 = vsel %vm6282_vm4, %v670_v23, %v671_v24  ;;  %v3949_v23 = vpack.c.bf16 %v3261_v19, %v3259_v18  ;;  %v6331_v19 = vmov 0 }
  0x46   : > { %3902 = vmatpush1.bf16.msra.mxu0 %v3901_v59  ;;  %631 = vmatprep.mubr.f32.mxu0 %v4487_v7  ;;  %v3246_v59 = vld [vmem:[%s6268_s1 + $0x2d8] sm:$0xff] }
  0x47   : > { %3904 = vmatprep.subr.bf16.mxu0 %v3903_v60  ;;  %v3933_v60 = vpack.c.bf16 %v3241_v57, %v3239_v56  ;;  %v3935_v62 = vpack.c.bf16 %v3246_v59, %v3244_v58 }
  0x49   : > { %3197 = vmatmul.mubr.msk.f32.gmra.mrb[4].mxu0 %vm449_vm3, %v4682_v36  ;;  %v3925_v36 = vpack.c.bf16 %v3233_v34, %v3231_v33  ;;  %v3271_v34 = vld [vmem:[%s6268_s1 + $0x380] sm:$0xff] }
  0x4a   : > { %3906 = vmatpush1.bf16.msra.mxu0 %v3905_v2  ;;  %637 = vmatprep.mubr.f32.mxu0 %v4487_v7  ;;  %v3250_v2 = vld [vmem:[%s6268_s1 + $0x2f8] sm:$0xff] }
  0x4b   : > { %3908 = vmatprep.subr.bf16.mxu0 %v3907_v3  ;;  %v3937_v3 = vpack.c.bf16 %v3245_v0, %v3243_v63  ;;  %v3939_v4 = vpack.c.bf16 %v3250_v2, %v3248_v1 }
  0x4d   : > { %3198 = vmatmul.mubr.msk.f32.gmra.mrb[6].mxu0 %vm449_vm3, %v4699_v44 }
  0x4e   : > { %3910 = vmatpush1.bf16.msra.mxu0 %v3909_v9  ;;  %749 = vmatprep.mubr.f32.mxu0 %v4487_v7  ;;  %v3258_v9 = vld [vmem:[%s6268_s1 + $0x318] sm:$0xff] }
  0x4f   : > { %3912 = vmatprep.subr.bf16.mxu0 %v3911_v10  ;;  %v3941_v10 = vpack.c.bf16 %v3249_v6, %v3247_v5  ;;  %v3943_v11 = vpack.c.bf16 %v3258_v9, %v3256_v8 }
  0x52   : > { %3914 = vmatpush1.bf16.msra.mxu0 %v3913_v15  ;;  %v3262_v15 = vld [vmem:[%s6268_s1 + $0x338] sm:$0xff] }
  0x53   : > { %3916 = vmatprep.subr.bf16.mxu0 %v3915_v16  ;;  %v3945_v16 = vpack.c.bf16 %v3257_v13, %v3255_v12  ;;  %v3947_v17 = vpack.c.bf16 %v3262_v15, %v3260_v14 }
  0x56   : > { %3918 = vmatpush1.bf16.msra.mxu0 %v3917_v22  ;;  %v3266_v22 = vld [vmem:[%s6268_s1 + $0x358] sm:$0xff] }
  0x57   : > { %3920 = vmatprep.subr.bf16.mxu0 %v3919_v26  ;;  %v3951_v24 = vpack.c.bf16 %v3266_v22, %v3264_v20  ;;  %v3263_v26 = vld [vmem:[%s6268_s1 + $0x340] sm:$0xff] }
  0x58   : > { %v3953_v29 = vpack.c.bf16 %v3265_v27, %v3263_v26 }
  0x59   : > { %3223 = vmatmul.mubr.msk.f32.vlgmr.msra.gmra.mrb[0].mxu0 %vm449_vm3, %v672_v25  ;;  %v3267_v25 = vld [vmem:[%s6268_s1 + $0x360] sm:$0xff] }
  0x5a   : > { %3922 = vmatpush1.bf16.msra.mxu0 %v3921_v30  ;;  %755 = vmatprep.mubr.f32.mxu0 %v4487_v7  ;;  %v3269_v30 = vld [vmem:[%s6268_s1 + $0x370] sm:$0xff] }
  0x5b   : > { %3924 = vmatprep.subr.bf16.mxu0 %v3923_v32  ;;  %v3957_v32 = vpack.c.bf16 %v3269_v30, %v3267_v25  ;;  %v4489_v25 = vmov 0.0|0.0  }
  0x5d   : > { %3224 = vmatmul.mubr.msk.f32.gmra.mrb[2].mxu0 %vm449_vm3, %v674_v40 }
  0x5e   : > { %3926 = vmatpush1.bf16.msra.mxu0 %v3925_v36  ;;  %761 = vmatprep.mubr.f32.mxu0 %v4487_v7  ;;  %v3961_v36 = vpack.c.bf16 %v3273_v35, %v3271_v34 }
  0x5f   : > { %3928 = vmatprep.subr.bf16.mxu0 %v3927_v42  ;;  %v3277_v42 = vld [vmem:[%s6268_s1 + $0x3b0] sm:$0xff] }
  0x61   : > { %3225 = vmatmul.mubr.msk.f32.gmra.mrb[4].mxu0 %vm449_vm3, %v676_v51 }
  0x62   : > { %3930 = vmatpush1.bf16.msra.mxu0 %v3929_v50  ;;  %767 = vmatprep.mubr.f32.mxu0 %v4487_v7 }
  0x63   : > { %3932 = vmatprep.subr.bf16.mxu0 %v3931_v55 }
  0x65   : > { %3226 = vmatmul.mubr.msk.f32.gmra.mrb[6].mxu0 %vm449_vm3, %v675_v41  ;;  %v3275_v41 = vld [vmem:[%s6268_s1 + $0x3a0] sm:$0xff] }
  0x66   : > { %3934 = vmatpush1.bf16.msra.mxu0 %v3933_v60  ;;  %887 = vmatprep.mubr.f32.mxu0 %v4487_v7  ;;  %v3965_v43 = vpack.c.bf16 %v3277_v42, %v3275_v41  ;;  %v2488_v41 = vld [vmem:[%s6272_s5 + $0x8] sm:$0xff] }
  0x67   : > { %3936 = vmatprep.subr.bf16.mxu0 %v3935_v62 }
  0x6a   : > { %3938 = vmatpush1.bf16.msra.mxu0 %v3937_v3 }
  0x6b   : > { %3940 = vmatprep.subr.bf16.mxu0 %v3939_v4 }
  0x6e   : > { %3942 = vmatpush1.bf16.msra.mxu0 %v3941_v10 }
  0x6f   : > { %3944 = vmatprep.subr.bf16.mxu0 %v3943_v11 }
  0x71   : > { %3251 = vmatmul.mubr.msk.f32.vlgmr.msra.gmra.mrb[0].mxu0 %vm449_vm3, %v4685_v37  ;;  %v3270_v37 = vld [vmem:[%s6268_s1 + $0x378] sm:$0xff] }
  0x72   : > { %3946 = vmatpush1.bf16.msra.mxu0 %v3945_v16  ;;  %893 = vmatprep.mubr.f32.mxu0 %v4487_v7  ;;  %v3955_v21 = vpack.c.bf16 %v3270_v37, %v3268_v28 }
  0x73   : > { %3948 = vmatprep.subr.bf16.mxu0 %v3947_v17 }
  0x75   : > { %3252 = vmatmul.mubr.msk.f32.gmra.mrb[2].mxu0 %vm449_vm3, %v4708_v48  ;;  %v3274_v48 = vld [vmem:[%s6268_s1 + $0x398] sm:$0xff] }
  0x76   : > { %3950 = vmatpush1.bf16.msra.mxu0 %v3949_v23  ;;  %899 = vmatprep.mubr.f32.mxu0 %v4487_v7  ;;  %v3959_v33 = vpack.c.bf16 %v3274_v48, %v3272_v31 }
  0x77   : > { %3952 = vmatprep.subr.bf16.mxu0 %v3951_v24 }
  0x79   : > { %3253 = vmatmul.mubr.msk.f32.gmra.mrb[4].mxu0 %vm449_vm3, %v4723_v53  ;;  %v3278_v53 = vld [vmem:[%s6268_s1 + $0x3b8] sm:$0xff] }
  0x7a   : > { %3954 = vmatpush1.bf16.msra.mxu0 %v3953_v29  ;;  %905 = vmatprep.mubr.f32.mxu0 %v4487_v7  ;;  %v3963_v40 = vpack.c.bf16 %v3278_v53, %v3276_v39  ;;  %v2487_v53 = vld [vmem:[%s6272_s5] sm:$0xff] }
  0x7b   : > { %3956 = vmatprep.subr.bf16.mxu0 %v3955_v21 }
  0x7d   : > { %3254 = vmatmul.mubr.msk.f32.gmra.mrb[6].mxu0 %vm449_vm3, %v813_v49  ;;  %v1060_v49 = vlaneseq }
  0x7e   : > { %3958 = vmatpush1.bf16.msra.mxu0 %v3957_v32  ;;  %1025 = vmatprep.mubr.f32.mxu0 %v4487_v7 }
  0x7f   : > { %3960 = vmatprep.subr.bf16.mxu0 %v3959_v33  ;;  %v1090_v11 = vand.u32 127, %v1060_v49  ;;  %v4490_v33 = vmov 1.0|1.0  }
  0x81   : > { %v5110_v26 = vmul.u32 2, %v1090_v11 }
  0x82   : > { %3962 = vmatpush1.bf16.msra.mxu0 %v3961_v36 }
  0x83   : > { %3964 = vmatprep.subr.bf16.mxu0 %v3963_v40 }
  0x86   : > { %3966 = vmatpush1.bf16.msra.mxu0 %v3965_v43 }
  0x89   : > { %3279 = vmatmul.mubr.msk.f32.vlgmr.msra.gmra.mrb[0].mxu0 %vm449_vm3, %v4688_v38  ;;  %v5081_v38 = vshrl.u32 %v1060_v49, 7  ;;  %v3539_v49 = vld [vmem:[%s6272_s5 + $0x50] sm:$0xff] }
  0x8a   : > { %1031 = vmatprep.mubr.f32.mxu0 %v4487_v7 }
  0x8b   : > { %v1062_v45 = vsub.s32 0, %v5081_v38  ;;  %v1066_v46 = vsub.s32 1, %v5081_v38  ;;  %v1091_v12 = vmul.u32 2, %v5081_v38  ;;  %v5094_v13 = vadd.s32 8, %v5081_v38 }
  0x8c   : > { %vm1304_vm11 = vcmp.eq.s32.totalorder %v5081_v38, %v5110_v26  ;;  %v5123_v37 = vadd.s32 16, %v5081_v38  ;;  %v5126_v29 = vadd.s32 24, %v5081_v38  ;;  %v5145_v31 = vadd.s32 32, %v5081_v38 }
  0x8d   : > { %3280 = vmatmul.mubr.msk.f32.gmra.mrb[2].mxu0 %vm449_vm3, %v4718_v52  ;;  %v1058_v52 = vld [vmem:[%s6269_s2] sm:$0x3]  ;;  %vm1093_vm7 = vcmp.eq.s32.totalorder %v1090_v11, %v1091_v12  ;;  %v1092_v22 = vmul.u32 2, %v5094_v13  ;;  %v1189_v24 = vadd.s32 1, %v1091_v12  ;;  %vm1305_vm12 = vcmp.eq.s32.totalorder %v5094_v13, %v5110_v26 }
  0x8e   : > { %1037 = vmatprep.mubr.f32.mxu0 %v4487_v7  ;;  %v1067_v44 = vrot.slane %v1058_v52, %v1066_v46  ;;  %v5108_v23 = vsel %vm1093_vm7, 1.0, %v4487_v7  ;;  %vm5136_vm14 = vmpackc.low %vm1305_vm12, %vm1304_vm11  ;;  %vm1306_vm15 = vcmp.eq.s32.totalorder %v5123_v37, %v5110_v26  ;;  %v5148_v48 = vadd.s32 40, %v5081_v38 }
  0x8f   : > { %vm1094_vm9 = vcmp.eq.s32.totalorder %v1090_v11, %v1092_v22  ;;  %vm1191_vm10 = vcmp.eq.s32.totalorder %v1090_v11, %v1189_v24  ;;  %v1190_v28 = vadd.s32 1, %v1092_v22  ;;  %vm1308_vm7 = vcmp.eq.s32.totalorder %v5145_v31, %v5110_v26 }
  0x90   : > { %v3284_v27 = vsel %vm1094_vm9, 1.0, %v4487_v7  ;;  %v5133_v21 = vsel %vm1191_vm10, 1.0, %v4487_v7  ;;  %vm1309_vm9 = vcmp.eq.s32.totalorder %v5148_v48, %v5110_v26  ;;  %v5167_v35 = vadd.s32 48, %v5081_v38 }
  0x91   : > { %3281 = vmatmul.mubr.msk.f32.gmra.mrb[4].mxu0 %vm449_vm3, %v4737_v61  ;;  %v1063_v61 = vrot.slane %v1058_v52, %v1062_v45  ;;  %vm1192_vm13 = vcmp.eq.s32.totalorder %v1090_v11, %v1190_v28  ;;  %v5170_v39 = vadd.s32 56, %v5081_v38  ;;  %vm5177_vm10 = vmpackc.low %vm1309_vm9, %vm1308_vm7  ;;  %v5186_v36 = vadd.s32 64, %v5081_v38  ;;  %v3386_v28 = vld [vmem:[%s6270_s3 + $0xc8] sm:$0xff] }
  0x92   : > { %1043 = vmatprep.mubr.f32.mxu0 %v4487_v7  ;;  %v3290_v32 = vsel %vm1192_vm13, 1.0, %v4487_v7  ;;  %vm1310_vm11 = vcmp.eq.s32.totalorder %v5167_v35, %v5110_v26  ;;  %v5189_v40 = vadd.s32 72, %v5081_v38  ;;  %v5204_v42 = vadd.s32 80, %v5081_v38 }
  0x93   : > { %vm1311_vm12 = vcmp.eq.s32.totalorder %v5170_v39, %v5110_v26  ;;  %vm1312_vm13 = vcmp.eq.s32.totalorder %v5186_v36, %v5110_v26  ;;  %v5207_v43 = vadd.s32 88, %v5081_v38  ;;  %v5222_v52 = vadd.s32 96, %v5081_v38 }
  0x94   : > { %vm1314_vm7 = vcmp.eq.s32.totalorder %v5204_v42, %v5110_v26  ;;  %v6325_v12 = vmov 0 }
  0x95   : > { %3282 = vmatmul.mubr.msk.f32.gmra.mrb[6].mxu0 %vm449_vm3, %v951_v54  ;;  %vm1307_vm3 = vcmp.eq.s32.totalorder %v5126_v29, %v5110_v26  ;;  %vm1315_vm9 = vcmp.eq.s32.totalorder %v5207_v43, %v5110_v26 }
  0x96   : > { %2260 = vmatprep.mubr.f32.mxu0 %v4487_v7 }
 0x15c   : > { %v1027_v47 = vpop.f32.mrb[0].mxu0 }
 0x15d   : > { %v1029_v54 = vpop.f32.mrb[1].mxu0  ;;  %v1070_v50 = vadd.f32 %v1063_v61, %v1027_v47  ;;  %v4235_v47 = vpack.c.bf16 %v2488_v41, %v2487_v53  ;;  %v3559_v53 = vld [vmem:[%s6272_s5 + $0xe0] sm:$0xff]  ;;  %v3560_v41 = vld [vmem:[%s6272_s5 + $0xe8] sm:$0xff] }
 0x15e   : > { %v1071_v51 = vadd.f32 %v1067_v44, %v1029_v54  ;;  %v5243_v54 = vadd.s32 120, %v5081_v38 }
 0x15f   : > { %v1078_v59 = vmax.f32 %v1070_v50, 0.0  ;;  %v2489_v50 = vld [vmem:[%s6272_s5 + $0x10] sm:$0xff] }
 0x160   : > { %v1033_v55 = vpop.f32.mrb[2].mxu0  ;;  %v1079_v62 = vmax.f32 %v1071_v51, 0.0  ;;  %v6315_v51 = vmov 0 }
 0x161   : > { %v1072_v56 = vadd.f32 %v1063_v61, %v1033_v55  ;;  %v1035_v57 = vpop.f32.mrb[3].mxu0  ;;  %v1298_v55 = vadd.s32 128, %v5081_v38 }
 0x162   : > { %v1073_v58 = vadd.f32 %v1067_v44, %v1035_v57  ;;  %v6317_v57 = vmov 0 }
 0x163   : > { %v1080_v60 = vmax.f32 %v1072_v56, 0.0  ;;  %v1299_v56 = vadd.s32 136, %v5081_v38 }
 0x164   : > { %v1081_v63 = vmax.f32 %v1073_v58, 0.0  ;;  %v1039_v0 = vpop.f32.mrb[4].mxu0  ;;  %v1300_v58 = vadd.s32 144, %v5081_v38 }
 0x165   : > { %v1041_v1 = vpop.f32.mrb[5].mxu0  ;;  %v3969_v2 = vpack.c.bf16 %v1080_v60, %v1078_v59  ;;  %v1074_v4 = vadd.f32 %v1063_v61, %v1039_v0  ;;  %v1301_v59 = vadd.s32 152, %v5081_v38  ;;  %v6319_v60 = vmov 0 }
 0x166   : > { %v3967_v3 = vpack.c.bf16 %v1081_v63, %v1079_v62  ;;  %v1075_v5 = vadd.f32 %v1067_v44, %v1041_v1  ;;  %v5294_v62 = vadd.s32 160, %v5081_v38  ;;  %v4491_v63 = vmov 1.0   ;;  %v3542_v1 = vld [vmem:[%s6272_s5 + $0x68] sm:$0xff] }
 0x167   : > { %v1082_v14 = vmax.f32 %v1074_v4, 0.0  ;;  %v5301_v0 = vadd.s32 1, %v5110_v26 }
 0x168   : > { %v1045_v6 = vpop.f32.mrb[6].mxu0  ;;  %3968 = vmatprep.subr.bf16.mxu1 %v3967_v3  ;;  %v1083_v16 = vmax.f32 %v1075_v5, 0.0 }
 0x169   : > { %v1076_v8 = vadd.f32 %v1063_v61, %v1045_v6  ;;  %v1047_v9 = vpop.f32.mrb[7].mxu0  ;;  %3970 = vmatpush1.bf16.msra.mxu1 %v3969_v2  ;;  %v5225_v61 = vadd.s32 104, %v5081_v38  ;;  %vm1468_vm2 = vcmp.eq.s32.totalorder %v1300_v58, %v5301_v0  ;;  %vm1469_vm1 = vcmp.eq.s32.totalorder %v1301_v59, %v5301_v0 }
 0x16a   : > { %v1077_v10 = vadd.f32 %v1067_v44, %v1047_v9  ;;  %v5240_v44 = vadd.s32 112, %v5081_v38 }
 0x16b   : > { %v1084_v15 = vmax.f32 %v1076_v8, 0.0 }
 0x16c   : > { %v1085_v17 = vmax.f32 %v1077_v10, 0.0 }
 0x16d   : > { %v3974_v18 = vpack.c.bf16 %v1084_v15, %v1082_v14 }
 0x16e   : > { %v3971_v20 = vpack.c.bf16 %v1085_v17, %v1083_v16  ;;  %v6327_v17 = vmov 0 }
 0x170   : > { %3973 = vmatprep.subr.msk.bf16.mxu1 %vm5098_vm6, %v3971_v20 }
 0x171   : > { %3976 = vmatpush1.bf16.msk.msra.mxu1 %vm5098_vm6, %v3974_v18 }
 0x172   : > { %3978 = vmatprep.subr.bf16.mxu1 %v3967_v3 }
 0x174   : > { %3287 = vmatmul.mubr.msk.f32.vlgmr.msra.gmra.mrb[0].mxu1 %vm1099_vm8, %v5108_v23 }
 0x175   : > { %3980 = vmatpush1.bf16.msra.mxu1 %v3969_v2  ;;  %1182 = vmatprep.mubr.f32.mxu1 %v4487_v7 }
 0x176   : > { %3983 = vmatprep.subr.msk.bf16.mxu1 %vm5098_vm6, %v3971_v20  ;;  %v6333_v20 = vmov 0 }
 0x178   : > { %3288 = vmatmul.mubr.msk.f32.gmra.mrb[2].mxu1 %vm1099_vm8, %v3284_v27  ;;  %v3384_v27 = vld [vmem:[%s6270_s3 + $0xb8] sm:$0xff] }
 0x179   : > { %3986 = vmatpush1.bf16.msk.msra.mxu1 %vm5098_vm6, %v3974_v18  ;;  %1267 = vmatprep.mubr.f32.mxu1 %v4487_v7  ;;  %vm5158_vm6 = vmpackc.low %vm1307_vm3, %vm1306_vm15  ;;  %vm1313_vm15 = vcmp.eq.s32.totalorder %v5189_v40, %v5110_v26  ;;  %v6329_v18 = vmov 0 }
 0x17a   : > { %3987 = vmatprep.subr.bf16.mxu1 %v4489_v25  ;;  %vm5213_vm3 = vmpackc.low %vm1313_vm15, %vm1312_vm13  ;;  %vm1317_vm13 = vcmp.eq.s32.totalorder %v5225_v61, %v5110_v26 }
 0x17c   : > { %3293 = vmatmul.mubr.msk.f32.vlgmr.msra.gmra.mrb[4].mxu1 %vm1099_vm8, %v5133_v21 }
 0x17d   : > { %1273 = vmatprep.mubr.f32.mxu1 %v4487_v7  ;;  %3989 = vmatpush1.bf16.msk.msra.mxu1 %vm5136_vm14, %v4490_v33 }
 0x17e   : > { %3990 = vmatprep.subr.bf16.mxu1 %v4489_v25 }
 0x180   : > { %3294 = vmatmul.mubr.msk.f32.gmra.mrb[6].mxu1 %vm1099_vm8, %v3290_v32  ;;  %vm5195_vm8 = vmpackc.low %vm1311_vm12, %vm1310_vm11  ;;  %vm1316_vm12 = vcmp.eq.s32.totalorder %v5222_v52, %v5110_v26  ;;  %v3390_v32 = vld [vmem:[%s6270_s3 + $0xe8] sm:$0xff] }
 0x181   : > { %3992 = vmatpush1.bf16.msk.msra.mxu1 %vm5158_vm6, %v4490_v33  ;;  %vm5231_vm11 = vmpackc.low %vm1315_vm9, %vm1314_vm7  ;;  %vm1318_vm7 = vcmp.eq.s32.totalorder %v5240_v44, %v5110_v26  ;;  %vm1319_vm9 = vcmp.eq.s32.totalorder %v5243_v54, %v5110_v26 }
 0x182   : > { %3993 = vmatprep.subr.bf16.mxu1 %v4489_v25  ;;  %vm5249_vm15 = vmpackc.low %vm1317_vm13, %vm1316_vm12  ;;  %vm1320_vm12 = vcmp.eq.s32.totalorder %v1298_v55, %v5110_v26  ;;  %vm1321_vm13 = vcmp.eq.s32.totalorder %v1299_v56, %v5110_v26 }
 0x183   : > { %vm5261_vm5 = vmpackc.low %vm1319_vm9, %vm1318_vm7  ;;  %vm1322_vm7 = vcmp.eq.s32.totalorder %v1300_v58, %v5110_v26  ;;  %vm1323_vm9 = vcmp.eq.s32.totalorder %v1301_v59, %v5110_v26 }
 0x184   : > { %v6316_v51 = vsel %vm5261_vm5, 4294967295, %v6315_v51  ;;  %vm5273_vm0 = vmpackc.low %vm1321_vm13, %vm1320_vm12  ;;  %vm1324_vm12 = vcmp.eq.s32.totalorder %v5294_v62, %v5110_v26  ;;  %vm1466_vm13 = vcmp.eq.s32.totalorder %v1298_v55, %v5301_v0  ;;  %v3396_v55 = vld [vmem:[%s6270_s3 + $0x118] sm:$0xff]  ;;  %v2493_v26 = vld [vmem:[%s6272_s5 + $0x30] sm:$0xff] }
 0x185   : > { %3995 = vmatpush1.bf16.msk.msra.mxu1 %vm5177_vm10, %v4490_v33  ;;  %v6318_v57 = vsel %vm5273_vm0, 4294967295, %v6317_v57  ;;  %vm5285_vm4 = vmpackc.low %vm1323_vm9, %vm1322_vm7  ;;  %vm1467_vm7 = vcmp.eq.s32.totalorder %v1299_v56, %v5301_v0  ;;  %v3398_v56 = vld [vmem:[%s6270_s3 + $0x128] sm:$0xff] }
 0x186   : > { %3996 = vmatprep.subr.bf16.mxu1 %v4489_v25  ;;  %v6320_v60 = vsel %vm5285_vm4, 4294967295, %v6319_v60  ;;  %vm5305_vm9 = vmpackc.low %vm1467_vm7, %vm1466_vm13  ;;  %vm1451_vm13 = vcmp.eq.s32.totalorder %v5094_v13, %v5301_v0  ;;  %vm6290_vm7 = vcmask 326656   ;;  %v4059_v59 = vpack.c.bf16 %v3398_v56, %v3396_v55 }
 0x189   : > { %3998 = vmatpush1.bf16.msk.msra.mxu1 %vm5195_vm8, %v4490_v33 }
 0x18a   : > { %3999 = vmatprep.subr.bf16.mxu1 %v4489_v25 }
 0x18d   : > { %4001 = vmatpush1.bf16.msk.msra.mxu1 %vm5213_vm3, %v4490_v33 }
 0x18e   : > { %4002 = vmatprep.subr.bf16.mxu1 %v4489_v25 }
 0x191   : > { %4004 = vmatpush1.bf16.msk.msra.mxu1 %vm5231_vm11, %v4490_v33 }
 0x192   : > { %4005 = vmatprep.subr.bf16.mxu1 %v4489_v25 }
 0x195   : > { %4007 = vmatpush1.bf16.msk.msra.mxu1 %vm5249_vm15, %v4490_v33 }
 0x196   : > { %4008 = vmatprep.subr.bf16.mxu1 %v4489_v25 }
 0x199   : > { %4010 = vmatpush1.bf16.msk.msra.mxu1 %vm5261_vm5, %v4490_v33  ;;  %vm1455_vm5 = vcmp.eq.s32.totalorder %v5148_v48, %v5301_v0  ;;  %v3388_v48 = vld [vmem:[%s6270_s3 + $0xd8] sm:$0xff] }
 0x19a   : > { %4011 = vmatprep.subr.bf16.mxu1 %v4489_v25 }
 0x19d   : > { %4013 = vmatpush1.bf16.msk.msra.mxu1 %vm5273_vm0, %v4490_v33 }
 0x19e   : > { %4014 = vmatprep.subr.bf16.mxu1 %v4489_v25 }
 0x1a1   : > { %4016 = vmatpush1.bf16.msk.msra.mxu1 %vm5285_vm4, %v4490_v33  ;;  %vm5311_vm4 = vmpackc.low %vm1469_vm1, %vm1468_vm2  ;;  %vm1452_vm1 = vcmp.eq.s32.totalorder %v5123_v37, %v5301_v0  ;;  %vm1453_vm2 = vcmp.eq.s32.totalorder %v5126_v29, %v5301_v0  ;;  %v3383_v37 = vld [vmem:[%s6270_s3 + $0xb0] sm:$0xff]  ;;  %v4047_v29 = vpack.c.bf16 %v3386_v28, %v3384_v27 }
 0x1a2   : > { %1414 = vmatprep.subr.mxu1 %v4487_v7 }
 0x1a5   : > { %3336 = vmatpush1.msk.msra.mxu1 %vm1324_vm12, %v4491_v63  ;;  %vm1450_vm12 = vcmp.eq.s32.totalorder %v5081_v38, %v5301_v0 }
 0x1a6   : > { %4017 = vmatprep.subr.bf16.mxu1 %v4489_v25  ;;  %vm5319_vm0 = vmpackc.low %vm1451_vm13, %vm1450_vm12  ;;  %vm1454_vm13 = vcmp.eq.s32.totalorder %v5145_v31, %v5301_v0  ;;  %v3385_v31 = vld [vmem:[%s6270_s3 + $0xc0] sm:$0xff] }
 0x1a7   : > { %v6326_v12 = vsel %vm5319_vm0, 4294967295, %v6325_v12  ;;  %vm5332_vm12 = vmpackc.low %vm1453_vm2, %vm1452_vm1  ;;  %vm1456_vm2 = vcmp.eq.s32.totalorder %v5167_v35, %v5301_v0  ;;  %v4049_v35 = vpack.c.bf16 %v3385_v31, %v3383_v37 }
 0x1a8   : > { %v6328_v17 = vsel %vm5332_vm12, 4294967295, %v6327_v17  ;;  %vm5346_vm1 = vmpackc.low %vm1455_vm5, %vm1454_vm13  ;;  %vm1458_vm5 = vcmp.eq.s32.totalorder %v5186_v36, %v5301_v0  ;;  %vm1459_vm13 = vcmp.eq.s32.totalorder %v5189_v40, %v5301_v0  ;;  %v3387_v36 = vld [vmem:[%s6270_s3 + $0xd0] sm:$0xff]  ;;  %v3389_v40 = vld [vmem:[%s6270_s3 + $0xe0] sm:$0xff] }
 0x1a9   : > { %v6330_v18 = vsel %vm5346_vm1, 4294967295, %v6329_v18 }
 0x247   : > { %v1178_v3 = vpop.f32.mrb[0].mxu1 }
 0x248   : > { %v1180_v4 = vpop.f32.mrb[1].mxu1 }
 0x24b   : > { %v1184_v5 = vpop.f32.mrb[2].mxu1 }
 0x24c   : > { %v1186_v6 = vpop.f32.mrb[3].mxu1 }
 0x24f   : > { %v1269_v8 = vpop.f32.mrb[4].mxu1 }
 0x250   : > { %v1280_v9 = vmax.f32 %v1178_v3, %v1269_v8  ;;  %v1271_v10 = vpop.f32.mrb[5].mxu1  ;;  %v3400_v3 = vld [vmem:[%s6270_s3 + $0x138] sm:$0xff]  ;;  %v3401_v8 = vld [vmem:[%s6270_s3 + $0x140] sm:$0xff] }
 0x251   : > { %v1281_v11 = vmax.f32 %v1180_v4, %v1271_v10  ;;  %v3402_v4 = vld [vmem:[%s6270_s3 + $0x148] sm:$0xff]  ;;  %v3404_v10 = vld [vmem:[%s6270_s3 + $0x158] sm:$0xf] }
 0x253   : > { %v1275_v14 = vpop.f32.mrb[6].mxu1  ;;  %3337 = vmatprep.mubr.msk.f32.mxu1 %vm6290_vm7, %v1281_v11 }
 0x254   : > { %v1282_v15 = vmax.f32 %v1184_v5, %v1275_v14  ;;  %v1277_v16 = vpop.f32.mrb[7].mxu1  ;;  %1439 = vmatmul.mubr.f32.vlgmr.msra.gmra.mrb[8].mxu1 %v1280_v9  ;;  %v4063_v5 = vpack.c.bf16 %v3402_v4, %v3400_v3  ;;  %v1591_v14 = vld [vmem:[%s6270_s3 + $0x8] sm:$0xff]  ;;  %v1596_v3 = vld [vmem:[%s6270_s3 + $0x30] sm:$0xff] }
 0x255   : > { %v1283_v13 = vmax.f32 %v1186_v6, %v1277_v16  ;;  %4019 = vmatpush1.bf16.msk.msra.mxu1 %vm5319_vm0, %v4490_v33  ;;  %vm1457_vm0 = vcmp.eq.s32.totalorder %v5170_v39, %v5301_v0  ;;  %v4051_v39 = vpack.c.bf16 %v3390_v32, %v3388_v48  ;;  %v3399_v6 = vld [vmem:[%s6270_s3 + $0x130] sm:$0xff]  ;;  %v1590_v32 = vld [vmem:[%s6270_s3] sm:$0xff] }
 0x256   : > { %4020 = vmatprep.subr.bf16.mxu1 %v4489_v25 }
 0x257   : > { %3338 = vmatprep.mubr.msk.f32.mxu1 %vm6290_vm7, %v1283_v13 }
 0x258   : > { %1444 = vmatmul.mubr.f32.gmra.mrb[10].mxu1 %v1282_v15 }
 0x259   : > { %4022 = vmatpush1.bf16.msk.msra.mxu1 %vm5332_vm12, %v4490_v33  ;;  %3381 = vmatprep.mubr.msk.f32.mxu1 %vm6290_vm7, %v1281_v11  ;;  %vm5358_vm12 = vmpackc.low %vm1457_vm0, %vm1456_vm2  ;;  %vm1460_vm0 = vcmp.eq.s32.totalorder %v5204_v42, %v5301_v0  ;;  %vm1461_vm2 = vcmp.eq.s32.totalorder %v5207_v43, %v5301_v0  ;;  %v3392_v42 = vld [vmem:[%s6270_s3 + $0xf8] sm:$0xff]  ;;  %v3394_v43 = vld [vmem:[%s6270_s3 + $0x108] sm:$0xff] }
 0x25a   : > { %4023 = vmatprep.subr.bf16.mxu1 %v4489_v25  ;;  %v6332_v19 = vsel %vm5358_vm12, 4294967295, %v6331_v19  ;;  %vm5370_vm7 = vmpackc.low %vm1459_vm13, %vm1458_vm5  ;;  %vm1462_vm5 = vcmp.eq.s32.totalorder %v5222_v52, %v5301_v0  ;;  %vm1463_vm13 = vcmp.eq.s32.totalorder %v5225_v61, %v5301_v0  ;;  %v4053_v52 = vpack.c.bf16 %v3389_v40, %v3387_v36  ;;  %v3403_v11 = vld [vmem:[%s6270_s3 + $0x150] sm:$0xf] }
 0x25b   : > { %v6334_v20 = vsel %vm5370_vm7, 4294967295, %v6333_v20  ;;  %v4055_v61 = vpack.c.bf16 %v3394_v43, %v3392_v42  ;;  %v1595_v43 = vld [vmem:[%s6270_s3 + $0x28] sm:$0xff] }
 0x25d   : > { %4025 = vmatpush1.bf16.msk.msra.mxu1 %vm5346_vm1, %v4490_v33  ;;  %vm5382_vm1 = vmpackc.low %vm1461_vm2, %vm1460_vm0  ;;  %vm1464_vm0 = vcmp.eq.s32.totalorder %v5240_v44, %v5301_v0  ;;  %vm1465_vm2 = vcmp.eq.s32.totalorder %v5243_v54, %v5301_v0  ;;  %v3391_v44 = vld [vmem:[%s6270_s3 + $0xf0] sm:$0xff]  ;;  %v3393_v54 = vld [vmem:[%s6270_s3 + $0x100] sm:$0xff] }
 0x25e   : > { %4026 = vmatprep.subr.bf16.mxu1 %v4489_v25  ;;  %v4057_v58 = vpack.c.bf16 %v3393_v54, %v3391_v44 }
 0x261   : > { %4028 = vmatpush1.bf16.msk.msra.mxu1 %vm5358_vm12, %v4490_v33  ;;  %vm5394_vm12 = vmpackc.low %vm1463_vm13, %vm1462_vm5  ;;  %vm1470_vm5 = vcmp.eq.s32.totalorder %v5294_v62, %v5301_v0  ;;  %vm6341_vm13 = vcmask 326656   ;;  %v3395_v62 = vld [vmem:[%s6270_s3 + $0x110] sm:$0xff] }
 0x262   : > { %4029 = vmatprep.subr.bf16.mxu1 %v4489_v25 }
 0x265   : > { %4031 = vmatpush1.bf16.msk.msra.mxu1 %vm5370_vm7, %v4490_v33  ;;  %vm5406_vm7 = vmpackc.low %vm1465_vm2, %vm1464_vm0  ;;  %vm6342_vm0 = vcmask 1043456  }
 0x266   : > { %4032 = vmatprep.subr.bf16.mxu1 %v4489_v25  ;;  %vm6343_vm2 = vmmov %vm6342_vm0 }
 0x269   : > { %4034 = vmatpush1.bf16.msk.msra.mxu1 %vm5382_vm1, %v4490_v33 }
 0x26a   : > { %4035 = vmatprep.subr.bf16.mxu1 %v4489_v25 }
 0x26d   : > { %4037 = vmatpush1.bf16.msk.msra.mxu1 %vm5394_vm12, %v4490_v33 }
 0x26e   : > { %4038 = vmatprep.subr.bf16.mxu1 %v4489_v25 }
 0x271   : > { %4040 = vmatpush1.bf16.msk.msra.mxu1 %vm5406_vm7, %v4490_v33 }
 0x272   : > { %4041 = vmatprep.subr.bf16.mxu1 %v4489_v25 }
 0x275   : > { %4043 = vmatpush1.bf16.msk.msra.mxu1 %vm5305_vm9, %v4490_v33 }
 0x276   : > { %4044 = vmatprep.subr.bf16.mxu1 %v4489_v25 }
 0x279   : > { %4046 = vmatpush1.bf16.msk.msra.mxu1 %vm5311_vm4, %v4490_v33 }
 0x27a   : > { %1553 = vmatprep.subr.mxu1 %v4487_v7 }
 0x27d   : > { %3380 = vmatpush1.msk.msra.mxu1 %vm1470_vm5, %v4491_v63  ;;  %v3397_v63 = vld [vmem:[%s6270_s3 + $0x120] sm:$0xff]  ;;  %vm6294_vm5 = vcmask 687104  }
 0x27e   : > { %1578 = vmatmul.mubr.f32.vlgmr.msra.gmra.mrb[12].mxu1 %v1280_v9  ;;  %4048 = vmatprep.subr.bf16.mxu1 %v4047_v29  ;;  %v4061_v0 = vpack.c.bf16 %v3397_v63, %v3395_v62  ;;  %v4065_v9 = vpack.c.bf16 %v3401_v8, %v3399_v6  ;;  %v1601_v6 = vld [vmem:[%s6270_s3 + $0x58] sm:$0xff] }
 0x27f   : > { %3382 = vmatprep.mubr.msk.f32.mxu1 %vm6341_vm13, %v1283_v13  ;;  %4050 = vmatpush1.bf16.msra.mxu1 %v4049_v35  ;;  %v1592_v35 = vld [vmem:[%s6270_s3 + $0x10] sm:$0xff]  ;;  %vm6344_vm13 = vcmask 1046528  }
 0x280   : > { %4052 = vmatprep.subr.bf16.mxu1 %v4051_v39  ;;  %v4069_v42 = vpack.c.bf16 %v1592_v35, %v1590_v32  ;;  %v1607_v32 = vld [vmem:[%s6270_s3 + $0x88] sm:$0xff]  ;;  %v1609_v35 = vld [vmem:[%s6270_s3 + $0x98] sm:$0xff] }
 0x282   : > { %1583 = vmatmul.mubr.f32.gmra.mrb[14].mxu1 %v1282_v15  ;;  %v1593_v15 = vld [vmem:[%s6270_s3 + $0x18] sm:$0xff] }
 0x283   : > { %1715 = vmatprep.mubr.f32.mxu1 %v4487_v7  ;;  %4054 = vmatpush1.bf16.msra.mxu1 %v4053_v52  ;;  %v4067_v16 = vpack.c.bf16 %v1593_v15, %v1591_v14  ;;  %v1597_v52 = vld [vmem:[%s6270_s3 + $0x38] sm:$0xff]  ;;  %v1598_v15 = vld [vmem:[%s6270_s3 + $0x40] sm:$0xff] }
 0x284   : > { %4056 = vmatprep.subr.bf16.mxu1 %v4055_v61  ;;  %v4071_v63 = vpack.c.bf16 %v1597_v52, %v1595_v43  ;;  %v1608_v43 = vld [vmem:[%s6270_s3 + $0x90] sm:$0xff] }
 0x287   : > { %4058 = vmatpush1.bf16.msra.mxu1 %v4057_v58 }
 0x288   : > { %4060 = vmatprep.subr.bf16.mxu1 %v4059_v59 }
 0x28b   : > { %4062 = vmatpush1.bf16.msra.mxu1 %v4061_v0  ;;  %v1594_v0 = vld [vmem:[%s6270_s3 + $0x20] sm:$0xff] }
 0x28c   : > { %4064 = vmatprep.subr.bf16.mxu1 %v4063_v5  ;;  %v1599_v5 = vld [vmem:[%s6270_s3 + $0x48] sm:$0xff] }
 0x28d   : > { %v4075_v14 = vpack.c.bf16 %v1601_v6, %v1599_v5 }
 0x28f   : > { %4066 = vmatpush1.bf16.msra.mxu1 %v4065_v9 }
 0x290   : > { %3405 = vmatprep.subr.msk.mxu1 %vm6342_vm0, %v3404_v10  ;;  %vm6345_vm0 = vcmask 1045504  }
 0x293   : > { %3406 = vmatpush1.msk.msra.mxu1 %vm6343_vm2, %v3403_v11  ;;  %vm6346_vm2 = vcmask 1044480   ;;  %v4073_v11 = vpack.c.bf16 %v1596_v3, %v1594_v0  ;;  %v3420_v0 = vld [vmem:[%s6270_s3 + $0x198] sm:$0xff]  ;;  %v1610_v3 = vld [vmem:[%s6270_s3 + $0xa0] sm:$0xf] }
 0x294   : > { %4068 = vmatprep.subr.bf16.mxu1 %v4067_v16  ;;  %v1600_v16 = vld [vmem:[%s6270_s3 + $0x50] sm:$0xff] }
 0x327   : > { %v1440_v13 = vpop.f32.mrb[8].mxu1 }
 0x328   : > { %v1442_v27 = vpop.f32.mrb[9].mxu1 }
 0x329   : > { %v1605_v27 = vld [vmem:[%s6270_s3 + $0x78] sm:$0xff] }
 0x32b   : > { %v1445_v28 = vpop.f32.mrb[10].mxu1 }
 0x32c   : > { %v1447_v37 = vpop.f32.mrb[11].mxu1 }
 0x351   : > { %v1579_v29 = vpop.f32.mrb[12].mxu1 }
 0x352   : > { %v5501_v31 = vmax.f32 %v1440_v13, %v1579_v29  ;;  %v1581_v48 = vpop.f32.mrb[13].mxu1  ;;  %v1603_v13 = vld [vmem:[%s6270_s3 + $0x68] sm:$0xff]  ;;  %v1602_v29 = vld [vmem:[%s6270_s3 + $0x60] sm:$0xff] }
 0x353   : > { %v4079_v37 = vpack.c.bf16 %v1605_v27, %v1603_v13  ;;  %v1604_v48 = vld [vmem:[%s6270_s3 + $0x70] sm:$0xff] }
 0x354   : > { %v1637_v61 = vrot.slane %v5501_v31, 1  ;;  %v1838_v44 = vrot.slane %v5501_v31, 2  ;;  %v1955_v54 = vrot.slane %v5501_v31, 3  ;;  %v2072_v55 = vrot.slane %v5501_v31, 4 }
 0x355   : > { %v1584_v39 = vpop.f32.mrb[14].mxu1 }
 0x356   : > { %v5509_v36 = vmax.f32 %v1445_v28, %v1584_v39  ;;  %v1586_v40 = vpop.f32.mrb[15].mxu1  ;;  %v4077_v28 = vpack.c.bf16 %v1600_v16, %v1598_v15  ;;  %v4081_v39 = vpack.c.bf16 %v1604_v48, %v1602_v29  ;;  %v3422_v15 = vld [vmem:[%s6270_s3 + $0x1a8] sm:$0xff]  ;;  %v3424_v16 = vld [vmem:[%s6270_s3 + $0x1b8] sm:$0xff] }
 0x357   : > { %v4083_v40 = vpack.c.bf16 %v1609_v35, %v1607_v32  ;;  %v4095_v27 = vpack.c.bf16 %v3424_v16, %v3422_v15  ;;  %v3426_v29 = vld [vmem:[%s6270_s3 + $0x1c8] sm:$0xff]  ;;  %v3425_v35 = vld [vmem:[%s6270_s3 + $0x1c0] sm:$0xff]  ;;  %v3443_v16 = vld [vmem:[%s6270_s3 + $0x230] sm:$0xff] }
 0x358   : > { %v1638_v56 = vrot.slane %v5509_v36, 1  ;;  %v1839_v58 = vrot.slane %v5509_v36, 2  ;;  %v1956_v59 = vrot.slane %v5509_v36, 3  ;;  %v2073_v62 = vrot.slane %v5509_v36, 4 }
 0x35a   : > { %v1639_v4 = vsel %vm6344_vm13, %v1637_v61, %v1638_v56  ;;  %v5541_v8 = vsel %vm6345_vm0, %v1838_v44, %v1839_v58  ;;  %v5546_v9 = vsel %vm6346_vm2, %v1955_v54, %v1956_v59  ;;  %vm6347_vm13 = vcmask 1043456   ;;  %v1611_v61 = vld [vmem:[%s6270_s3 + $0xa8] sm:$0xf]  ;;  %v3416_v54 = vld [vmem:[%s6270_s3 + $0x178] sm:$0xff] }
 0x35b   : > { %v5551_v10 = vsel %vm6347_vm13, %v2072_v55, %v2073_v62  ;;  %3407 = vmatmul.mubr.msk.f32.vlgmr.msra.gmra.mrb[16].mxu1 %vm6294_vm5, %v1639_v4  ;;  %v3414_v44 = vld [vmem:[%s6270_s3 + $0x168] sm:$0xff]  ;;  %v3413_v55 = vld [vmem:[%s6270_s3 + $0x160] sm:$0xff]  ;;  %vm6348_vm0 = vmmov %vm6347_vm13 }
 0x35c   : > { %4070 = vmatpush1.bf16.msra.mxu1 %v4069_v42  ;;  %1721 = vmatprep.mubr.f32.mxu1 %v4487_v7  ;;  %v1606_v42 = vld [vmem:[%s6270_s3 + $0x80] sm:$0xff]  ;;  %v4087_v4 = vpack.c.bf16 %v3416_v54, %v3414_v44  ;;  %vm6349_vm2 = vmmov %vm6348_vm0  ;;  %v3431_v44 = vld [vmem:[%s6270_s3 + $0x1f0] sm:$0xff] }
 0x35d   : > { %4072 = vmatprep.subr.bf16.mxu1 %v4071_v63  ;;  %v4085_v52 = vpack.c.bf16 %v1608_v43, %v1606_v42  ;;  %v3418_v63 = vld [vmem:[%s6270_s3 + $0x188] sm:$0xff]  ;;  %v3432_v42 = vld [vmem:[%s6270_s3 + $0x1f8] sm:$0xff]  ;;  %vm6350_vm13 = vmmov %vm6348_vm0 }
 0x35e   : > { %v4091_v6 = vpack.c.bf16 %v3420_v0, %v3418_v63  ;;  %v3442_v63 = vld [vmem:[%s6270_s3 + $0x228] sm:$0xff]  ;;  %v3439_v0 = vld [vmem:[%s6270_s3 + $0x210] sm:$0xff] }
 0x35f   : > { %3408 = vmatmul.mubr.msk.f32.gmra.mrb[18].mxu1 %vm6294_vm5, %v1638_v56  ;;  %v3415_v56 = vld [vmem:[%s6270_s3 + $0x170] sm:$0xff] }
 0x360   : > { %4074 = vmatpush1.bf16.msra.mxu1 %v4073_v11  ;;  %1802 = vmatprep.mubr.f32.mxu1 %v4487_v7  ;;  %v4089_v5 = vpack.c.bf16 %v3415_v56, %v3413_v55  ;;  %v3417_v11 = vld [vmem:[%s6270_s3 + $0x180] sm:$0xff]  ;;  %v3434_v55 = vld [vmem:[%s6270_s3 + $0x208] sm:$0xf]  ;;  %v3440_v56 = vld [vmem:[%s6270_s3 + $0x218] sm:$0xff] }
 0x361   : > { %4076 = vmatprep.subr.bf16.mxu1 %v4075_v14  ;;  %v3419_v14 = vld [vmem:[%s6270_s3 + $0x190] sm:$0xff] }
 0x362   : > { %v4093_v13 = vpack.c.bf16 %v3419_v14, %v3417_v11  ;;  %v4107_v11 = vpack.c.bf16 %v3442_v63, %v3440_v56  ;;  %v3460_v56 = vld [vmem:[%s6270_s3 + $0x2b8] sm:$0xf]  ;;  %v3466_v63 = vld [vmem:[%s6270_s3 + $0x2c8] sm:$0xff] }
 0x364   : > { %4078 = vmatpush1.bf16.msra.mxu1 %v4077_v28  ;;  %v3421_v28 = vld [vmem:[%s6270_s3 + $0x1a0] sm:$0xff] }
 0x365   : > { %4080 = vmatprep.subr.bf16.mxu1 %v4079_v37  ;;  %v3423_v37 = vld [vmem:[%s6270_s3 + $0x1b0] sm:$0xff] }
 0x366   : > { %v4097_v48 = vpack.c.bf16 %v3423_v37, %v3421_v28  ;;  %v3450_v28 = vld [vmem:[%s6270_s3 + $0x268] sm:$0xff] }
 0x368   : > { %4082 = vmatpush1.bf16.msra.mxu1 %v4081_v39  ;;  %v3427_v39 = vld [vmem:[%s6270_s3 + $0x1d0] sm:$0xff] }
 0x369   : > { %4084 = vmatprep.subr.bf16.mxu1 %v4083_v40  ;;  %v3430_v40 = vld [vmem:[%s6270_s3 + $0x1e8] sm:$0xff]  ;;  %v4101_v43 = vpack.c.bf16 %v3427_v39, %v3425_v35 }
 0x36c   : > { %4086 = vmatpush1.bf16.msra.mxu1 %v4085_v52  ;;  %v4103_v52 = vpack.c.bf16 %v3432_v42, %v3430_v40  ;;  %v3451_v40 = vld [vmem:[%s6270_s3 + $0x270] sm:$0xff]  ;;  %v3453_v42 = vld [vmem:[%s6270_s3 + $0x280] sm:$0xff] }
 0x36d   : > { %3409 = vmatprep.subr.msk.mxu1 %vm6348_vm0, %v1611_v61  ;;  %v3429_v61 = vld [vmem:[%s6270_s3 + $0x1e0] sm:$0xff] }
 0x36e   : > { %v4105_v54 = vpack.c.bf16 %v3431_v44, %v3429_v61  ;;  %v3455_v44 = vld [vmem:[%s6270_s3 + $0x290] sm:$0xff] }
 0x370   : > { %3410 = vmatpush1.msk.msra.mxu1 %vm6349_vm2, %v1610_v3  ;;  %v3441_v3 = vld [vmem:[%s6270_s3 + $0x220] sm:$0xff]  ;;  %vm6351_vm2 = vmmov %vm6348_vm0 }
 0x371   : > { %3411 = vmatmul.mubr.msk.f32.vlgmr.msra.gmra.mrb[16].mxu1 %vm6294_vm5, %v5501_v31  ;;  %4088 = vmatprep.subr.bf16.mxu1 %v4087_v4  ;;  %v3428_v31 = vld [vmem:[%s6270_s3 + $0x1d8] sm:$0xff]  ;;  %v4109_v14 = vpack.c.bf16 %v3441_v3, %v3439_v0  ;;  %v3465_v3 = vld [vmem:[%s6270_s3 + $0x2c0] sm:$0xff] }
 0x372   : > { %4090 = vmatpush1.bf16.msra.mxu1 %v4089_v5  ;;  %1808 = vmatprep.mubr.f32.mxu1 %v4487_v7  ;;  %v4099_v32 = vpack.c.bf16 %v3428_v31, %v3426_v29  ;;  %v3444_v4 = vld [vmem:[%s6270_s3 + $0x238] sm:$0xff]  ;;  %v3446_v5 = vld [vmem:[%s6270_s3 + $0x248] sm:$0xff]  ;;  %v3447_v31 = vld [vmem:[%s6270_s3 + $0x250] sm:$0xff] }
 0x373   : > { %4092 = vmatprep.subr.bf16.mxu1 %v4091_v6  ;;  %v3433_v6 = vld [vmem:[%s6270_s3 + $0x200] sm:$0xf]  ;;  %v4111_v15 = vpack.c.bf16 %v3446_v5, %v3444_v4  ;;  %v3468_v0 = vld [vmem:[%s6270_s3 + $0x2d8] sm:$0xff]  ;;  %v3467_v4 = vld [vmem:[%s6270_s3 + $0x2d0] sm:$0xff] }
 0x374   : > { %v3470_v5 = vld [vmem:[%s6270_s3 + $0x2e8] sm:$0xff] }
 0x375   : > { %3412 = vmatmul.mubr.msk.f32.gmra.mrb[18].mxu1 %vm6294_vm5, %v5509_v36 }
 0x376   : > { %4094 = vmatpush1.bf16.msra.mxu1 %v4093_v13  ;;  %1915 = vmatprep.mubr.f32.mxu1 %v4487_v7  ;;  %v3445_v13 = vld [vmem:[%s6270_s3 + $0x240] sm:$0xff] }
 0x377   : > { %4096 = vmatprep.subr.bf16.mxu1 %v4095_v27  ;;  %v3448_v27 = vld [vmem:[%s6270_s3 + $0x258] sm:$0xff]  ;;  %v4113_v37 = vpack.c.bf16 %v3445_v13, %v3443_v16  ;;  %v3469_v13 = vld [vmem:[%s6270_s3 + $0x2e0] sm:$0xff] }
 0x378   : > { %v4115_v29 = vpack.c.bf16 %v3450_v28, %v3448_v27  ;;  %v3471_v27 = vld [vmem:[%s6270_s3 + $0x2f0] sm:$0xff]  ;;  %v3474_v28 = vld [vmem:[%s6270_s3 + $0x308] sm:$0xff] }
 0x37a   : > { %4098 = vmatpush1.bf16.msra.mxu1 %v4097_v48  ;;  %v3449_v48 = vld [vmem:[%s6270_s3 + $0x260] sm:$0xff] }
 0x37b   : > { %4100 = vmatprep.subr.bf16.mxu1 %v4099_v32  ;;  %v3452_v32 = vld [vmem:[%s6270_s3 + $0x278] sm:$0xff]  ;;  %v4117_v35 = vpack.c.bf16 %v3449_v48, %v3447_v31  ;;  %v3473_v48 = vld [vmem:[%s6270_s3 + $0x300] sm:$0xff] }
 0x37e   : > { %4102 = vmatpush1.bf16.msra.mxu1 %v4101_v43  ;;  %v3456_v43 = vld [vmem:[%s6270_s3 + $0x298] sm:$0xff] }
 0x37f   : > { %4104 = vmatprep.subr.bf16.mxu1 %v4103_v52  ;;  %v4121_v52 = vpack.c.bf16 %v3453_v42, %v3451_v40  ;;  %v3477_v40 = vld [vmem:[%s6270_s3 + $0x320] sm:$0xff]  ;;  %v3479_v42 = vld [vmem:[%s6270_s3 + $0x330] sm:$0xff] }
 0x382   : > { %4106 = vmatpush1.bf16.msra.mxu1 %v4105_v54  ;;  %v3457_v54 = vld [vmem:[%s6270_s3 + $0x2a0] sm:$0xff] }
 0x383   : > { %3435 = vmatprep.subr.msk.mxu1 %vm6350_vm13, %v3434_v55  ;;  %v4125_v55 = vpack.c.bf16 %v3457_v54, %v3455_v44  ;;  %vm6352_vm13 = vmmov %vm6348_vm0  ;;  %v3483_v44 = vld [vmem:[%s6270_s3 + $0x350] sm:$0xff] }
 0x386   : > { %3436 = vmatpush1.msk.msra.mxu1 %vm6348_vm0, %v3433_v6  ;;  %v3472_v6 = vld [vmem:[%s6270_s3 + $0x2f8] sm:$0xff] }
 0x387   : > { %3437 = vmatmul.mubr.msk.f32.vlgmr.msra.gmra.mrb[16].mxu1 %vm6294_vm5, %v5541_v8  ;;  %4108 = vmatprep.subr.bf16.mxu1 %v4107_v11  ;;  %v3454_v8 = vld [vmem:[%s6270_s3 + $0x288] sm:$0xff]  ;;  %v3459_v11 = vld [vmem:[%s6270_s3 + $0x2b0] sm:$0xf]  ;;  %v4131_v16 = vpack.c.bf16 %v3472_v6, %v3470_v5 }
 0x388   : > { %4110 = vmatpush1.bf16.msra.mxu1 %v4109_v14  ;;  %1921 = vmatprep.mubr.f32.mxu1 %v4487_v7  ;;  %v4119_v39 = vpack.c.bf16 %v3454_v8, %v3452_v32  ;;  %v4127_v14 = vpack.c.bf16 %v3468_v0, %v3466_v63  ;;  %v3475_v32 = vld [vmem:[%s6270_s3 + $0x310] sm:$0xff]  ;;  %v3478_v8 = vld [vmem:[%s6270_s3 + $0x328] sm:$0xff]  ;;  %v2166_v63 = vld [vmem:[%s6271_s4] sm:$0x3] }
 0x389   : > { %4112 = vmatprep.subr.bf16.mxu1 %v4111_v15  ;;  %v4129_v15 = vpack.c.bf16 %v3467_v4, %v3465_v3  ;;  %v2171_v0 = vrot.slane %v2166_v63, %v1062_v45  ;;  %v2175_v4 = vrot.slane %v2166_v63, %v1066_v46 }
 0x38b   : > { %3438 = vmatmul.mubr.msk.f32.gmra.mrb[18].mxu1 %vm6294_vm5, %v1839_v58  ;;  %v3458_v58 = vld [vmem:[%s6270_s3 + $0x2a8] sm:$0xff] }
 0x38c   : > { %4114 = vmatpush1.bf16.msra.mxu1 %v4113_v37  ;;  %2032 = vmatprep.mubr.f32.mxu1 %v4487_v7  ;;  %v4123_v61 = vpack.c.bf16 %v3458_v58, %v3456_v43  ;;  %v3476_v37 = vld [vmem:[%s6270_s3 + $0x318] sm:$0xff]  ;;  %v3482_v43 = vld [vmem:[%s6270_s3 + $0x348] sm:$0xff]  ;;  %v4141_v58 = vpack.c.bf16 %v3479_v42, %v3477_v40 }
 0x38d   : > { %4116 = vmatprep.subr.bf16.mxu1 %v4115_v29  ;;  %v4133_v29 = vpack.c.bf16 %v3471_v27, %v3469_v13  ;;  %v4135_v31 = vpack.c.bf16 %v3476_v37, %v3474_v28  ;;  %v2494_v37 = vld [vmem:[%s6272_s5 + $0x38] sm:$0xff] }
 0x38e   : > { %v3548_v40 = vld [vmem:[%s6272_s5 + $0x98] sm:$0xff] }
 0x390   : > { %4118 = vmatpush1.bf16.msra.mxu1 %v4117_v35  ;;  %v4137_v35 = vpack.c.bf16 %v3475_v32, %v3473_v48  ;;  %v4244_v48 = vpack.c.bf16 %v2494_v37, %v2493_v26  ;;  %v3581_v26 = vld [vmem:[%s6272_s5 + $0x180] sm:$0xff]  ;;  %v3582_v37 = vld [vmem:[%s6272_s5 + $0x188] sm:$0xff] }
 0x391   : > { %4120 = vmatprep.subr.bf16.mxu1 %v4119_v39 }
 0x394   : > { %4122 = vmatpush1.bf16.msra.mxu1 %v4121_v52 }
 0x395   : > { %4124 = vmatprep.subr.bf16.mxu1 %v4123_v61  ;;  %v3481_v61 = vld [vmem:[%s6270_s3 + $0x340] sm:$0xff] }
 0x396   : > { %v4145_v54 = vpack.c.bf16 %v3483_v44, %v3481_v61  ;;  %v3551_v61 = vld [vmem:[%s6272_s5 + $0xa0] sm:$0xff]  ;;  %v3552_v44 = vld [vmem:[%s6272_s5 + $0xa8] sm:$0xff] }
 0x398   : > { %4126 = vmatpush1.bf16.msra.mxu1 %v4125_v55  ;;  %v3486_v55 = vld [vmem:[%s6270_s3 + $0x368] sm:$0xf] }
 0x399   : > { %3461 = vmatprep.subr.msk.mxu1 %vm6351_vm2, %v3460_v56  ;;  %v3485_v56 = vld [vmem:[%s6270_s3 + $0x360] sm:$0xf]  ;;  %vm6353_vm2 = vmmov %vm6348_vm0 }
 0x39c   : > { %3462 = vmatpush1.msk.msra.mxu1 %vm6352_vm13, %v3459_v11  ;;  %vm2189_vm13 = vcmask 1041408  }
 0x39d   : > { %3463 = vmatmul.mubr.msk.f32.vlgmr.msra.gmra.mrb[16].mxu1 %vm6294_vm5, %v5546_v9  ;;  %4128 = vmatprep.subr.bf16.mxu1 %v4127_v14  ;;  %v3480_v9 = vld [vmem:[%s6270_s3 + $0x338] sm:$0xff] }
 0x39e   : > { %4130 = vmatpush1.bf16.msra.mxu1 %v4129_v15  ;;  %2038 = vmatprep.mubr.f32.mxu1 %v4487_v7  ;;  %v4139_v39 = vpack.c.bf16 %v3480_v9, %v3478_v8  ;;  %v2495_v8 = vld [vmem:[%s6272_s5 + $0x40] sm:$0xff]  ;;  %v2496_v9 = vld [vmem:[%s6272_s5 + $0x48] sm:$0xff] }
 0x39f   : > { %4132 = vmatprep.subr.bf16.mxu1 %v4131_v16 }
 0x3a1   : > { %3464 = vmatmul.mubr.msk.f32.gmra.mrb[18].mxu1 %vm6294_vm5, %v1956_v59  ;;  %v3484_v59 = vld [vmem:[%s6270_s3 + $0x358] sm:$0xff] }
 0x3a2   : > { %4134 = vmatpush1.bf16.msra.mxu1 %v4133_v29  ;;  %2149 = vmatprep.mubr.f32.mxu1 %v4487_v7  ;;  %v4143_v52 = vpack.c.bf16 %v3484_v59, %v3482_v43  ;;  %v3545_v29 = vld [vmem:[%s6272_s5 + $0x80] sm:$0xff] }
 0x3a3   : > { %4136 = vmatprep.subr.bf16.mxu1 %v4135_v31  ;;  %v3546_v31 = vld [vmem:[%s6272_s5 + $0x88] sm:$0xff] }
 0x3a4   : > { %v4229_v32 = vpack.c.bf16 %v3546_v31, %v3545_v29  ;;  %v4292_v29 = vpack.c.bf16 %v3582_v37, %v3581_v26 }
 0x3a6   : > { %4138 = vmatpush1.bf16.msra.mxu1 %v4137_v35  ;;  %v4247_v35 = vpack.c.bf16 %v2496_v9, %v2495_v8  ;;  %v2915_v9 = vld [vmem:[%s6274_s7 + $0x10] sm:$0xff] }
 0x3a7   : > { %4140 = vmatprep.subr.bf16.mxu1 %v4139_v39  ;;  %v3547_v39 = vld [vmem:[%s6272_s5 + $0x90] sm:$0xff] }
 0x3a8   : > { %v4232_v42 = vpack.c.bf16 %v3548_v40, %v3547_v39  ;;  %v2917_v40 = vld [vmem:[%s6274_s7 + $0x20] sm:$0xff] }
 0x3aa   : > { %4142 = vmatpush1.bf16.msra.mxu1 %v4141_v58  ;;  %v3562_v58 = vld [vmem:[%s6272_s5 + $0xf0] sm:$0xff] }
 0x3ab   : > { %4144 = vmatprep.subr.bf16.mxu1 %v4143_v52  ;;  %v3563_v52 = vld [vmem:[%s6272_s5 + $0xf8] sm:$0xff] }
 0x3ae   : > { %4146 = vmatpush1.bf16.msra.mxu1 %v4145_v54 }
 0x3af   : > { %3487 = vmatprep.subr.msk.mxu1 %vm6348_vm0, %v3486_v55  ;;  %vm6354_vm0 = vmmov 1   ;;  %v4265_v55 = vpack.c.bf16 %v3563_v52, %v3562_v58  ;;  %v2920_v58 = vld [vmem:[%s6274_s7 + $0x38] sm:$0xff] }
 0x3b2   : > { %3488 = vmatpush1.msk.msra.mxu1 %vm6353_vm2, %v3485_v56  ;;  %vm4148_vm2 = vmpackc.low %vm2189_vm13, %vm6354_vm0  ;;  %vm6362_vm13 = vnez %v6334_v20  ;;  %v3544_v20 = vld [vmem:[%s6272_s5 + $0x78] sm:$0xff] }
 0x3b3   : > { %3489 = vmatmul.mubr.msk.f32.vlgmr.msra.gmra.mrb[16].mxu1 %vm6294_vm5, %v5551_v10  ;;  %4219 = vmatprep.subr.bf16.mxu1 %v4489_v25 }
 0x3b4   : > { %2155 = vmatprep.mubr.f32.mxu1 %v4487_v7 }
 0x3b7   : > { %3490 = vmatmul.mubr.msk.f32.gmra.mrb[18].mxu1 %vm6294_vm5, %v2073_v62  ;;  %vm2186_vm5 = vcmask 80896  }
 0x486   : > { %v2151_v3 = vpop.f32.mrb[16].mxu1 }
 0x487   : > { %v2153_v10 = vpop.f32.mrb[17].mxu1  ;;  %v2178_v5 = vadd.f32 %v2171_v0, %v2151_v3  ;;  %v3565_v3 = vld [vmem:[%s6272_s5 + $0x108] sm:$0xff] }
 0x488   : > { %v2179_v6 = vadd.f32 %v2175_v4, %v2153_v10 }
 0x489   : > { %v2182_v62 = vmax.f32 %v2178_v5, 0.0  ;;  %v3553_v5 = vld [vmem:[%s6272_s5 + $0xb0] sm:$0xff] }
 0x48a   : > { %v2157_v11 = vpop.f32.mrb[18].mxu1  ;;  %v2183_v13 = vmax.f32 %v2179_v6, 0.0  ;;  %v3554_v6 = vld [vmem:[%s6272_s5 + $0xb8] sm:$0xff] }
 0x48b   : > { %v2180_v14 = vadd.f32 %v2171_v0, %v2157_v11  ;;  %v2159_v15 = vpop.f32.mrb[19].mxu1  ;;  %v3564_v0 = vld [vmem:[%s6272_s5 + $0x100] sm:$0xff] }
 0x48c   : > { %v2181_v36 = vadd.f32 %v2175_v4, %v2159_v15  ;;  %v4250_v4 = vpack.c.bf16 %v3552_v44, %v3551_v61  ;;  %v4268_v11 = vpack.c.bf16 %v3565_v3, %v3564_v0  ;;  %v3567_v15 = vld [vmem:[%s6272_s5 + $0x118] sm:$0xff]  ;;  %v2921_v61 = vld [vmem:[%s6274_s7 + $0x40] sm:$0xff]  ;;  %v2922_v44 = vld [vmem:[%s6274_s7 + $0x48] sm:$0xff] }
 0x48d   : > { %v2184_v16 = vmax.f32 %v2180_v14, 0.0  ;;  %v3566_v14 = vld [vmem:[%s6272_s5 + $0x110] sm:$0xff]  ;;  %v2925_v0 = vld [vmem:[%s6274_s7 + $0x60] sm:$0xff]  ;;  %v2926_v3 = vld [vmem:[%s6274_s7 + $0x68] sm:$0xff] }
 0x48e   : > { %v2185_v27 = vmax.f32 %v2181_v36, 0.0  ;;  %v4253_v36 = vpack.c.bf16 %v3554_v6, %v3553_v5  ;;  %v3004_v5 = vld [vmem:[%s6276_s9] sm:$0xff]  ;;  %v3005_v6 = vld [vmem:[%s6276_s9 + $0x8] sm:$0xff] }
 0x48f   : > { %v4150_v28 = vpack.c.bf16 %v2184_v16, %v2182_v62  ;;  %v3555_v62 = vld [vmem:[%s6272_s5 + $0xc0] sm:$0xff]  ;;  %v3556_v16 = vld [vmem:[%s6272_s5 + $0xc8] sm:$0xff] }
 0x490   : > { %v4147_v45 = vpack.c.bf16 %v2185_v27, %v2183_v13  ;;  %v4271_v13 = vpack.c.bf16 %v3567_v15, %v3566_v14  ;;  %v3568_v27 = vld [vmem:[%s6272_s5 + $0x120] sm:$0xff]  ;;  %v4316_v14 = vpack.c.bf16 %v3005_v6, %v3004_v5  ;;  %v3007_v15 = vld [vmem:[%s6276_s9 + $0x18] sm:$0xff] }
 0x492   : > { %4149 = vmatprep.subr.msk.bf16.mxu0 %vm4148_vm2, %v4147_v45 }
 0x493   : > { %4152 = vmatpush1.bf16.msk.msra.mxu0 %vm4148_vm2, %v4150_v28 }
 0x494   : > { %4155 = vmatprep.subr.msk.bf16.mxu0 %vm4148_vm2, %v4147_v45  ;;  %v4256_v45 = vpack.c.bf16 %v3556_v16, %v3555_v62  ;;  %v3008_v62 = vld [vmem:[%s6276_s9 + $0x20] sm:$0xff]  ;;  %v3009_v16 = vld [vmem:[%s6276_s9 + $0x28] sm:$0xff] }
 0x496   : > { %3493 = vmatmul.mubr.msk.f32.vlgmr.msra.gmra.mrb[8].mxu0 %vm2186_vm5, %v5108_v23 }
 0x497   : > { %4158 = vmatpush1.bf16.msk.msra.mxu0 %vm4148_vm2, %v4150_v28  ;;  %2333 = vmatprep.mubr.f32.mxu0 %v4487_v7  ;;  %v3569_v28 = vld [vmem:[%s6272_s5 + $0x128] sm:$0xff] }
 0x498   : > { %4159 = vmatprep.subr.bf16.mxu0 %v4489_v25 }
 0x49a   : > { %3496 = vmatmul.mubr.msk.f32.vlgmr.msra.gmra.mrb[10].mxu0 %vm2186_vm5, %v5133_v21  ;;  %vm6361_vm5 = vnez %v6332_v19  ;;  %v3543_v19 = vld [vmem:[%s6272_s5 + $0x70] sm:$0xff] }
 0x49b   : > { %4161 = vmatpush1.bf16.msk.msra.mxu0 %vm5136_vm14, %v4490_v33  ;;  %vm6355_vm14 = vnez %v6316_v51  ;;  %v2490_v51 = vld [vmem:[%s6272_s5 + $0x18] sm:$0xff]  ;;  %v4226_v24 = vpack.c.bf16 %v3544_v20, %v3543_v19  ;;  %v3579_v20 = vld [vmem:[%s6272_s5 + $0x170] sm:$0xff] }
 0x49c   : > { %4162 = vmatprep.subr.bf16.mxu0 %v4489_v25  ;;  %v4238_v2 = vpack.c.bf16 %v2490_v51, %v2489_v50  ;;  %v3574_v50 = vld [vmem:[%s6272_s5 + $0x148] sm:$0xff] }
 0x49f   : > { %4164 = vmatpush1.bf16.msk.msra.mxu0 %vm5158_vm6, %v4490_v33  ;;  %vm6356_vm6 = vnez %v6318_v57 }
 0x4a0   : > { %4165 = vmatprep.subr.bf16.mxu0 %v4489_v25 }
 0x4a3   : > { %4167 = vmatpush1.bf16.msk.msra.mxu0 %vm5177_vm10, %v4490_v33  ;;  %vm6357_vm10 = vnez %v6320_v60  ;;  %v3541_v60 = vld [vmem:[%s6272_s5 + $0x60] sm:$0xff] }
 0x4a4   : > { %4168 = vmatprep.subr.bf16.mxu0 %v4489_v25 }
 0x4a7   : > { %4170 = vmatpush1.bf16.msk.msra.mxu0 %vm5195_vm8, %v4490_v33  ;;  %vm2342_vm8 = vcmask 261120  }
 0x4a8   : > { %4171 = vmatprep.subr.bf16.mxu0 %v4489_v25 }
 0x4ab   : > { %4173 = vmatpush1.bf16.msk.msra.mxu0 %vm5213_vm3, %v4490_v33  ;;  %vm6358_vm3 = vnez %v6326_v12  ;;  %v4223_v12 = vpack.c.bf16 %v3542_v1, %v3541_v60  ;;  %v3575_v1 = vld [vmem:[%s6272_s5 + $0x150] sm:$0xff] }
 0x4ac   : > { %4174 = vmatprep.subr.bf16.mxu0 %v4489_v25 }
 0x4af   : > { %4176 = vmatpush1.bf16.msk.msra.mxu0 %vm5231_vm11, %v4490_v33  ;;  %vm6359_vm11 = vnez %v6328_v17  ;;  %v2491_v17 = vld [vmem:[%s6272_s5 + $0x20] sm:$0xff] }
 0x4b0   : > { %4177 = vmatprep.subr.bf16.mxu0 %v4489_v25 }
 0x4b3   : > { %4179 = vmatpush1.bf16.msk.msra.mxu0 %vm5249_vm15, %v4490_v33  ;;  %vm6360_vm15 = vnez %v6330_v18  ;;  %v2492_v18 = vld [vmem:[%s6272_s5 + $0x28] sm:$0xff] }
 0x4b4   : > { %4180 = vmatprep.subr.bf16.mxu0 %v4489_v25  ;;  %v4241_v22 = vpack.c.bf16 %v2492_v18, %v2491_v17  ;;  %v3577_v17 = vld [vmem:[%s6272_s5 + $0x160] sm:$0xff]  ;;  %v3578_v18 = vld [vmem:[%s6272_s5 + $0x168] sm:$0xff] }
 0x4b5   : > { %v4286_v19 = vpack.c.bf16 %v3578_v18, %v3577_v17  ;;  %v3014_v18 = vld [vmem:[%s6276_s9 + $0x50] sm:$0xf] }
 0x4b7   : > { %4182 = vmatpush1.bf16.msk.msra.mxu0 %vm6355_vm14, %v4490_v33 }
 0x4b8   : > { %4183 = vmatprep.subr.bf16.mxu0 %v4489_v25 }
 0x4bb   : > { %4185 = vmatpush1.bf16.msk.msra.mxu0 %vm6356_vm6, %v4490_v33 }
 0x4bc   : > { %4186 = vmatprep.subr.bf16.mxu0 %v4489_v25 }
 0x4bf   : > { %4188 = vmatpush1.bf16.msk.msra.mxu0 %vm6357_vm10, %v4490_v33 }
 0x4c0   : > { %4189 = vmatprep.subr.bf16.mxu0 %v4489_v25 }
 0x569   : > { %v2262_v38 = vpop.f32.mrb[8].mxu0 }
 0x56a   : > { %v2264_v46 = vpop.f32.mrb[9].mxu0 }
 0x56d   : > { %v2335_v23 = vpop.f32.mrb[10].mxu0 }
 0x56e   : > { %v2340_v21 = vmax.f32 %v2262_v38, %v2335_v23  ;;  %v2337_v30 = vpop.f32.mrb[11].mxu0  ;;  %v3557_v38 = vld [vmem:[%s6272_s5 + $0xd0] sm:$0xff]  ;;  %v4274_v23 = vpack.c.bf16 %v3569_v28, %v3568_v27  ;;  %v3011_v28 = vld [vmem:[%s6276_s9 + $0x38] sm:$0xff] }
 0x56f   : > { %v2341_v34 = vmax.f32 %v2264_v46, %v2337_v30  ;;  %v3558_v46 = vld [vmem:[%s6272_s5 + $0xd8] sm:$0xff]  ;;  %v3010_v27 = vld [vmem:[%s6276_s9 + $0x30] sm:$0xff] }
 0x570   : > { %v3571_v30 = vld [vmem:[%s6272_s5 + $0x138] sm:$0xff] }
 0x571   : > { %3517 = vmatprep.mubr.msk.f32.mxu0 %vm2342_vm8, %v2341_v34 }
 0x572   : > { %2411 = vmatmul.mubr.f32.vlgmr.msra.gmra.mrb[12].mxu0 %v2340_v21 }
 0x573   : > { %4191 = vmatpush1.bf16.msk.msra.mxu0 %vm6358_vm3, %v4490_v33  ;;  %3538 = vmatprep.mubr.msk.f32.mxu0 %vm2342_vm8, %v2341_v34  ;;  %v4259_v34 = vpack.c.bf16 %v3558_v46, %v3557_v38 }
 0x574   : > { %4192 = vmatprep.subr.bf16.mxu0 %v4489_v25 }
 0x577   : > { %4194 = vmatpush1.bf16.msk.msra.mxu0 %vm6359_vm11, %v4490_v33 }
 0x578   : > { %4195 = vmatprep.subr.bf16.mxu0 %v4489_v25 }
 0x57b   : > { %4197 = vmatpush1.bf16.msk.msra.mxu0 %vm6360_vm15, %v4490_v33 }
 0x57c   : > { %4198 = vmatprep.subr.bf16.mxu0 %v4489_v25 }
 0x57f   : > { %4200 = vmatpush1.bf16.msk.msra.mxu0 %vm6361_vm5, %v4490_v33 }
 0x580   : > { %4201 = vmatprep.subr.bf16.mxu0 %v4489_v25 }
 0x583   : > { %4203 = vmatpush1.bf16.msk.msra.mxu0 %vm6362_vm13, %v4490_v33 }
 0x584   : > { %4204 = vmatprep.subr.bf16.mxu0 %v4489_v25 }
 0x587   : > { %4206 = vmatpush1.bf16.msk.msra.mxu0 %vm5382_vm1, %v4490_v33  ;;  %vm6364_vm1 = vcmask 687104  }
 0x588   : > { %4207 = vmatprep.subr.bf16.mxu0 %v4489_v25 }
 0x58b   : > { %4209 = vmatpush1.bf16.msk.msra.mxu0 %vm5394_vm12, %v4490_v33  ;;  %vm6363_vm12 = vcmask 1043456  }
 0x58c   : > { %4210 = vmatprep.subr.bf16.mxu0 %v4489_v25 }
 0x58f   : > { %4212 = vmatpush1.bf16.msk.msra.mxu0 %vm5406_vm7, %v4490_v33  ;;  %vm2929_vm7 = vcmask 982016  }
 0x590   : > { %4213 = vmatprep.subr.bf16.mxu0 %v4489_v25 }
 0x593   : > { %4215 = vmatpush1.bf16.msk.msra.mxu0 %vm5305_vm9, %v4490_v33  ;;  %vm2510_vm9 = vcmask 654336  }
 0x594   : > { %4216 = vmatprep.subr.bf16.mxu0 %v4489_v25 }
 0x597   : > { %4218 = vmatpush1.bf16.msk.msra.mxu0 %vm5311_vm4, %v4490_v33  ;;  %v3540_v33 = vld [vmem:[%s6272_s5 + $0x58] sm:$0xff]  ;;  %vm4492_vm4 = vmmov 0  }
 0x598   : > { %4234 = vmatprep.subr.bf16.mxu0 %v4489_v25  ;;  %v4220_v57 = vpack.c.bf16 %v3540_v33, %v3539_v49  ;;  %3694 = vmatprep.mubr.msk.f32.mxu1 %vm4492_vm4, %v4487_v7  ;;  %v3573_v33 = vld [vmem:[%s6272_s5 + $0x140] sm:$0xff] }
 0x59a   : > { %2481 = vmatmul.mubr.f32.vlgmr.msra.gmra.mrb[14].mxu0 %v2340_v21  ;;  %4221 = vmatpush3.bf16.msra.mxu1 %v4220_v57  ;;  %v3570_v21 = vld [vmem:[%s6272_s5 + $0x130] sm:$0xff]  ;;  %v4280_v57 = vpack.c.bf16 %v3574_v50, %v3573_v33 }
 0x59b   : > { %4236 = vmatpush3.bf16.msra.mxu0 %v4235_v47  ;;  %4222 = vmatprep.subr.bf16.mxu1 %v4489_v25  ;;  %v4277_v49 = vpack.c.bf16 %v3571_v30, %v3570_v21  ;;  %v4262_v47 = vpack.c.bf16 %v3560_v41, %v3559_v53 }
 0x59c   : > { %4237 = vmatprep.subr.bf16.mxu0 %v4489_v25  ;;  %3717 = vmatprep.mubr.msk.f32.mxu0 %vm4492_vm4, %v4487_v7 }
 0x59e   : > { %4224 = vmatpush3.bf16.msra.mxu1 %v4223_v12 }
 0x59f   : > { %4239 = vmatpush3.bf16.msra.mxu0 %v4238_v2  ;;  %4225 = vmatprep.subr.bf16.mxu1 %v4489_v25  ;;  %v3576_v2 = vld [vmem:[%s6272_s5 + $0x158] sm:$0xff] }
 0x5a0   : > { %4240 = vmatprep.subr.bf16.mxu0 %v4489_v25  ;;  %v4283_v12 = vpack.c.bf16 %v3576_v2, %v3575_v1  ;;  %v3012_v2 = vld [vmem:[%s6276_s9 + $0x40] sm:$0xff] }
 0x5a2   : > { %4227 = vmatpush3.bf16.msra.mxu1 %v4226_v24 }
 0x5a3   : > { %4242 = vmatpush3.bf16.msra.mxu0 %v4241_v22  ;;  %4228 = vmatprep.subr.bf16.mxu1 %v4489_v25  ;;  %v3580_v22 = vld [vmem:[%s6272_s5 + $0x178] sm:$0xff] }
 0x5a4   : > { %4243 = vmatprep.subr.bf16.mxu0 %v4489_v25  ;;  %v4289_v24 = vpack.c.bf16 %v3580_v22, %v3579_v20 }
 0x5a6   : > { %4230 = vmatpush3.bf16.msra.mxu1 %v4229_v32  ;;  %v2914_v32 = vld [vmem:[%s6274_s7 + $0x8] sm:$0xff] }
 0x5a7   : > { %4245 = vmatpush3.bf16.msra.mxu0 %v4244_v48  ;;  %4231 = vmatprep.subr.bf16.mxu1 %v4489_v25  ;;  %v2913_v48 = vld [vmem:[%s6274_s7] sm:$0xff] }
 0x5a8   : > { %4246 = vmatprep.subr.bf16.mxu0 %v4489_v25  ;;  %v4295_v8 = vpack.c.bf16 %v2914_v32, %v2913_v48 }
 0x5aa   : > { %4233 = vmatpush3.bf16.msra.mxu1 %v4232_v42  ;;  %v2918_v42 = vld [vmem:[%s6274_s7 + $0x28] sm:$0xff] }
 0x5ab   : > { %4248 = vmatpush3.bf16.msra.mxu0 %v4247_v35  ;;  %4249 = vmatprep.subr.bf16.mxu1 %v4489_v25  ;;  %v2916_v35 = vld [vmem:[%s6274_s7 + $0x18] sm:$0xff] }
 0x5ac   : > { %4264 = vmatprep.subr.bf16.mxu0 %v4489_v25  ;;  %v4298_v39 = vpack.c.bf16 %v2916_v35, %v2915_v9 }
 0x645   : > { %v2412_v43 = vpop.f32.mrb[12].mxu0 }
 0x646   : > { %v2414_v59 = vpop.f32.mrb[13].mxu0 }
 0x647   : > { %v2919_v59 = vld [vmem:[%s6274_s7 + $0x30] sm:$0xff] }
 0x648   : > { %v4304_v52 = vpack.c.bf16 %v2920_v58, %v2919_v59 }
 0x66d   : > { %v2482_v54 = vpop.f32.mrb[14].mxu0 }
 0x66e   : > { %v6004_v56 = vmax.f32 %v2412_v43, %v2482_v54  ;;  %v2484_v63 = vpop.f32.mrb[15].mxu0  ;;  %v4301_v43 = vpack.c.bf16 %v2918_v42, %v2917_v40  ;;  %v4307_v54 = vpack.c.bf16 %v2922_v44, %v2921_v61 }
 0x670   : > { %v2509_v10 = vrot.slane %v6004_v56, 1  ;;  %3718 = vmatmul.mubr.msk.f32.vlgmr.msra.gmra.mrb[16].mxu0 %vm2510_vm9, %v6004_v56  ;;  %v2751_v51 = vrot.slane %v6004_v56, 3  ;;  %v2666_v60 = vrot.slane %v6004_v56, 2  ;;  %v2836_v31 = vrot.slane %v6004_v56, 4  ;;  %v2924_v56 = vld [vmem:[%s6274_s7 + $0x58] sm:$0xff] }
 0x671   : > { %4266 = vmatpush3.bf16.msra.mxu0 %v4265_v55  ;;  %3763 = vmatprep.mubr.msk.f32.mxu0 %vm4492_vm4, %v4487_v7  ;;  %v2923_v55 = vld [vmem:[%s6274_s7 + $0x50] sm:$0xff] }
 0x672   : > { %3695 = vmatmul.mubr.msk.f32.vlgmr.msra.gmra.mrb[20].mxu1 %vm2510_vm9, %v2509_v10  ;;  %4267 = vmatprep.subr.bf16.mxu0 %v4489_v25  ;;  %v4310_v63 = vpack.c.bf16 %v2924_v56, %v2923_v55  ;;  %v2927_v10 = vld [vmem:[%s6274_s7 + $0x70] sm:$0xff] }
 0x673   : > { %4251 = vmatpush3.bf16.msra.mxu1 %v4250_v4  ;;  %3740 = vmatprep.mubr.msk.f32.mxu1 %vm4492_vm4, %v4487_v7  ;;  %v4313_v4 = vpack.c.bf16 %v2926_v3, %v2925_v0 }
 0x674   : > { %4252 = vmatprep.subr.bf16.mxu1 %v4489_v25 }
 0x675   : > { %4269 = vmatpush3.bf16.msra.mxu0 %v4268_v11  ;;  %v3006_v11 = vld [vmem:[%s6276_s9 + $0x10] sm:$0xff] }
 0x676   : > { %4270 = vmatprep.subr.bf16.mxu0 %v4489_v25 }
 0x677   : > { %4254 = vmatpush3.bf16.msra.mxu1 %v4253_v36  ;;  %v4319_v36 = vpack.c.bf16 %v3007_v15, %v3006_v11 }
 0x678   : > { %4255 = vmatprep.subr.bf16.mxu1 %v4489_v25 }
 0x679   : > { %4272 = vmatpush3.bf16.msra.mxu0 %v4271_v13  ;;  %v4322_v13 = vpack.c.bf16 %v3009_v16, %v3008_v62 }
 0x67a   : > { %4273 = vmatprep.subr.bf16.mxu0 %v4489_v25 }
 0x67b   : > { %4257 = vmatpush3.bf16.msra.mxu1 %v4256_v45  ;;  %v4325_v45 = vpack.c.bf16 %v3011_v28, %v3010_v27 }
 0x67c   : > { %4258 = vmatprep.subr.bf16.mxu1 %v4489_v25 }
 0x67d   : > { %4275 = vmatpush3.bf16.msra.mxu0 %v4274_v23 }
 0x67e   : > { %4276 = vmatprep.subr.bf16.mxu0 %v4489_v25 }
 0x67f   : > { %4260 = vmatpush3.bf16.msra.mxu1 %v4259_v34 }
 0x680   : > { %4261 = vmatprep.subr.bf16.mxu1 %v4489_v25 }
 0x681   : > { %4278 = vmatpush3.bf16.msra.mxu0 %v4277_v49 }
 0x682   : > { %4294 = vmatprep.subr.bf16.mxu0 %v4489_v25 }
 0x683   : > { %4263 = vmatpush3.bf16.msra.mxu1 %v4262_v47 }
 0x684   : > { %3764 = vmatmul.mubr.msk.f32.vlgmr.msra.gmra.mrb[18].mxu0 %vm2510_vm9, %v2751_v51  ;;  %4279 = vmatprep.subr.bf16.mxu1 %v4489_v25  ;;  %v2910_v51 = vld [vmem:[%s6273_s6] sm:$0x1] }
 0x685   : > { %3819 = vmatprep.mubr.msk.f32.mxu0 %vm4492_vm4, %v4487_v7  ;;  %4296 = vmatpush3.bf16.msra.mxu0 %v4295_v8 }
 0x686   : > { %3741 = vmatmul.mubr.msk.f32.vlgmr.msra.gmra.mrb[22].mxu1 %vm2510_vm9, %v2666_v60  ;;  %4297 = vmatprep.subr.bf16.mxu0 %v4489_v25 }
 0x687   : > { %4281 = vmatpush3.bf16.msra.mxu1 %v4280_v57  ;;  %3786 = vmatprep.mubr.msk.f32.mxu1 %vm4492_vm4, %v4487_v7 }
 0x688   : > { %4282 = vmatprep.subr.bf16.mxu1 %v4489_v25 }
 0x689   : > { %4299 = vmatpush3.bf16.msra.mxu0 %v4298_v39 }
 0x68a   : > { %4300 = vmatprep.subr.bf16.mxu0 %v4489_v25 }
 0x68b   : > { %4284 = vmatpush3.bf16.msra.mxu1 %v4283_v12  ;;  %v3013_v12 = vld [vmem:[%s6276_s9 + $0x48] sm:$0xff] }
 0x68c   : > { %4285 = vmatprep.subr.bf16.mxu1 %v4489_v25  ;;  %v4328_v17 = vpack.c.bf16 %v3013_v12, %v3012_v2 }
 0x68d   : > { %4302 = vmatpush3.bf16.msra.mxu0 %v4301_v43 }
 0x68e   : > { %4303 = vmatprep.subr.bf16.mxu0 %v4489_v25 }
 0x68f   : > { %4287 = vmatpush3.bf16.msra.mxu1 %v4286_v19  ;;  %v2928_v19 = vld [vmem:[%s6275_s8] sm:$0x1] }
 0x690   : > { %4288 = vmatprep.subr.bf16.mxu1 %v4489_v25 }
 0x691   : > { %4305 = vmatpush3.bf16.msra.mxu0 %v4304_v52 }
 0x692   : > { %4306 = vmatprep.subr.bf16.mxu0 %v4489_v25 }
 0x693   : > { %4290 = vmatpush3.bf16.msra.mxu1 %v4289_v24 }
 0x694   : > { %4291 = vmatprep.subr.bf16.mxu1 %v4489_v25 }
 0x695   : > { %4308 = vmatpush3.bf16.msra.mxu0 %v4307_v54 }
 0x696   : > { %4309 = vmatprep.subr.bf16.mxu0 %v4489_v25 }
 0x697   : > { %4293 = vmatpush3.bf16.msra.mxu1 %v4292_v29 }
 0x698   : > { %4315 = vmatprep.subr.bf16.mxu1 %v4489_v25 }
 0x699   : > { %4311 = vmatpush3.bf16.msra.mxu0 %v4310_v63 }
 0x69a   : > { %3787 = vmatmul.mubr.msk.f32.vlgmr.msra.gmra.mrb[24].mxu1 %vm2510_vm9, %v2836_v31  ;;  %4312 = vmatprep.subr.bf16.mxu0 %v4489_v25 }
 0x69b   : > { %3844 = vmatprep.mubr.msk.f32.mxu1 %vm4492_vm4, %v4487_v7  ;;  %4317 = vmatpush3.bf16.msra.mxu1 %v4316_v14 }
 0x69c   : > { %4318 = vmatprep.subr.bf16.mxu1 %v4489_v25 }
 0x69d   : > { %4314 = vmatpush3.bf16.msra.mxu0 %v4313_v4 }
 0x69e   : > { %3817 = vmatprep.subr.mxu0 %v4487_v7 }
 0x69f   : > { %4320 = vmatpush3.bf16.msra.mxu1 %v4319_v36 }
 0x6a0   : > { %4321 = vmatprep.subr.bf16.mxu1 %v4489_v25 }
 0x6a1   : > { %3818 = vmatpush3.msra.mxu0 %v2927_v10 }
 0x6a3   : > { %4323 = vmatpush3.bf16.msra.mxu1 %v4322_v13 }
 0x6a4   : > { %4324 = vmatprep.subr.bf16.mxu1 %v4489_v25 }
 0x6a7   : > { %4326 = vmatpush3.bf16.msra.mxu1 %v4325_v45 }
 0x6a8   : > { %4327 = vmatprep.subr.bf16.mxu1 %v4489_v25 }
 0x6ab   : > { %4329 = vmatpush3.bf16.msra.mxu1 %v4328_v17 }
 0x6ac   : > { %3842 = vmatprep.subr.mxu1 %v4487_v7  ;;  %v3015_v7 = vld [vmem:[%s6277_s10] sm:$0x1] }
 0x6af   : > { %3843 = vmatpush3.msk.msra.mxu1 %vm6363_vm12, %v3014_v18 }
 0x743   : > { %v2651_v38 = vpop.f32.mrb[16].mxu0 }
 0x744   : > { %v3719_v46 = vpop.f32.mrb[17].mxu0 }
 0x745   : > { %v2579_v23 = vpop.f32.mrb[20].mxu1 }
 0x746   : > { %v2652_v21 = vadd.f32 %v2651_v38, %v2579_v23  ;;  %v3696_v30 = vpop.f32.mrb[21].mxu1 }
 0x757   : > { %v2820_v34 = vpop.f32.mrb[18].mxu0 }
 0x758   : > { %v3765_v53 = vpop.f32.mrb[19].mxu0 }
 0x759   : > { %v2735_v41 = vpop.f32.mrb[22].mxu1 }
 0x75a   : > { %v2739_v49 = vadd.f32 %v2735_v41, %v2652_v21  ;;  %v3742_v47 = vpop.f32.mrb[23].mxu1 }
 0x75c   : > { %v2824_v33 = vadd.f32 %v2820_v34, %v2739_v49 }
 0x76d   : > { %v2905_v50 = vpop.f32.mrb[24].mxu1 }
 0x76e   : > { %v2909_v57 = vadd.f32 %v2905_v50, %v2824_v33  ;;  %v3788_v60 = vpop.f32.mrb[25].mxu1 }
 0x770   : > { %v2911_v1 = vadd.f32 %v2910_v51, %v2909_v57 }
 0x772   : > { %v2912_v25 = vmax.f32 %v2911_v1, 0.0 }
 0x774   : > { %3820 = vmatmul.mubr.msk.f32.vlgmr.msra.gmra.mrb[20].mxu0 %vm2929_vm7, %v2912_v25 }
 0x847   : > { %v2999_v20 = vpop.f32.mrb[20].mxu0 }
 0x848   : > { %v3000_v22 = vadd.f32 %v2999_v20, %v2928_v19  ;;  %v3821_v24 = vpop.f32.mrb[21].mxu0 }
 0x84a   : > { %v3003_v26 = vmax.f32 %v3000_v22, 0.0 }
 0x84c   : > { %3845 = vmatmul.mubr.msk.f32.vlgmr.msra.gmra.mrb[26].mxu1 %vm6364_vm1, %v3003_v26 }
 0x91f   : > { %v3088_v37 = vpop.f32.mrb[26].mxu1 }
 0x920   : > { %v3089_v29 = vadd.f32 %v3088_v37, %v3015_v7  ;;  %v3846_v31 = vpop.f32.mrb[27].mxu1 }
 0x922   : > { %3092 = vst [vmem:[%s378_s29] sm:$0x1] %v3089_v29 }
 0x923   : > { %4436 = shalt.err (!%p4433_p3)
}
 0x924   : > { %s4437_s15 = scalar_lea.hbm %s6225_s13, 16  ;;  %s4441_s29 = scalar_lea.hbm %s6278_s11, 32 }
 0x925   : > { %p4438_p4 = scmp.ne.s32.totalorder %s6225_s13, %s4437_s15  ;;  %p4442_p9 = scmp.lt.u32.totalorder %s6225_s13, %s6278_s11 }
 0x926   : > { %p4443_p10 = scmp.lt.u32.totalorder %s4441_s29, %s4437_s15  ;;  %p4445_p12 = scmp.lt.u32.totalorder %s4437_s15, %s6225_s13 }
 0x927   : > { %p4439_p7 = pnand %p4438_p4, %p4592_p5 }
 0x928   : > { %p4444_p11 = por %p4443_p10, %p4442_p9 }
 0x929   : > { %p4440_p8 = pneg %p4439_p7 }
 0x92a   : > { %p4446_p13 = por %p4445_p12, %p4444_p11 }
 0x92c   : > { %p4447_p0 = pnand %p4446_p13, %p4440_p8 }
 0x92e   : > { %4450 = shalt.err (!%p4447_p0)
}
 0x92f   : > { %4378 = dma.vmem_to_hbm [thread:$0]  (%p4592_p5), %s6227_s24, 16, %s6225_s13, %s3094_s30  }
 0x930 PF: > { %p4384_p1 = scmp.ge.s32.totalorder %s4485_s20, 2  ;;  %s3118_s14 = sand.u32 1, %s4473_s17  }
 0x931   : > { %s3119_s21 = scalar_lea.sflag [#allocation3], %s3118_s14 }
 0x932   : > { %p4381_p2 = pnand %p4384_p1, %p4596_p6 }
 0x934   : > { %4468 = dma.done.wait (!%p4381_p2), %s3119_s21, 16  }
 0x935   : > { %4470 = vsyncadd (!%p4381_p2), %s3119_s21, 4294967280  ;;  %s6365_s19 = sld [smem:[#allocation5_spill]]  ;;  %s6366_s16 = sld [smem:[#allocation6_spill]] }
 0x936   : > { %p21_p3 = scmp.ge.s32.totalorder %s4579_s23, 4   ;;  %s6367_s17 = smov %s4477_s18 }
 0x937   : > { %s6370_s20 = smov %s4579_s23 }
 0x938   :  { %23 = sbr.rel (!%p21_p3) target bundleno = 3 (0x3), region = 111 }
 0x93b   : > { %s6368_s18 = smov %s6365_s19  ;;  %s6369_s19 = smov %s6366_s16 }
 0x93f   :  { %3123 = vsyncpa [#allocation3], 1 }
 0x940   :  { %3125 = vsyncpa [#allocation3 + $0x1], 1 }

</bundles_post_ra>
